<compile_context>
chip_gen: v7x
topology: tpu7x:2x2x1
jax: 0.10.0
libtpu: 0.0.40
codegen_flags: <defaults>
</compile_context>

<pallas_src>
import functools

import jax
import jax.numpy as jnp
from jax.experimental import pallas as pl
from jax.experimental.pallas import tpu as pltpu


def _ru(n, m):
    return ((n + m - 1) // m) * m


# ----------------------------------------------------------------------------
# Fused kernel: bn1 -> dwconv(k=2) -> maxpool(5) -> bn2 -> dwconv(k=3, same)
#               -> maxpool(3) -> flatten -> [BN -> Linear -> ReLU -> BN]x3
#               -> Linear
# All conv-stage tensors live on the (bm, CW) channel-contiguous layout:
# lane i = c*L + m holds channel c, position m (don't-care lanes never reach
# the output because the fused Linear1 weight has zero rows there).
# ----------------------------------------------------------------------------
def cnn_fused_kernel(x_ref, cp_ref, w1e_ref, b1e_ref, bna_s_ref, bna_b_ref,
                     w2_ref, b2_ref, bnb_s_ref, bnb_b_ref,
                     w3_ref, b3_ref, bnc_s_ref, bnc_b_ref,
                     w4_ref, b4_ref, o_ref):
    cp = cp_ref[...]                          # (11, CW) per-lane conv params
    bn1_s, bn1_b = cp[0:1], cp[1:2]
    c1a, c1b, c1bias = cp[2:3], cp[3:4], cp[4:5]
    bn2_s, bn2_b = cp[5:6], cp[6:7]
    c2a, c2b, c2c, c2bias = cp[7:8], cp[8:9], cp[9:10], cp[10:11]

    def roll(v, shift):
        # out[i] = v[i + shift]  (lane rotation on the XLU; shift is static)
        return pltpu.roll(v, (-shift) % v.shape[-1], axis=1)

    # BatchNorm1d (eval, folded affine)
    xb = x_ref[...] * bn1_s + bn1_b                              # (bm, CW)

    # depthwise Conv1d, kernel_size=2, stride=1, padding=0
    y = xb * c1a + roll(xb, 1) * c1b + c1bias

    # max_pool1d(kernel_size=5): pooled value at channel-relative lanes 5*j.
    # Balanced max tree (depth 3) over 5 parallel shifted copies.
    m01 = jnp.maximum(y, roll(y, 1))
    m23 = jnp.maximum(roll(y, 2), roll(y, 3))
    p = jnp.maximum(jnp.maximum(m01, m23), roll(y, 4))

    # BatchNorm1d (eval, folded affine)
    pb = p * bn2_s + bn2_b

    # depthwise Conv1d, kernel_size=3, padding=1 ('same'): +/-5-lane
    # neighbours via XLU rolls; the zero boundary padding is pre-folded into
    # the per-lane masked taps c2a / c2c (built host-side).
    yc = roll(pb, -5) * c2a + pb * c2b + roll(pb, 5) * c2c + c2bias

    # max_pool1d(kernel_size=3): valid value at channel-relative lanes 15*t
    z = jnp.maximum(jnp.maximum(yc, roll(yc, 5)), roll(yc, 10))

    # flatten + BatchNorm1d(F) + Linear1 folded into one lane-dilated bf16
    # weight (zero rows except at lanes c*L + 15*t) -> single MXU dot.
    h = jnp.dot(z.astype(jnp.bfloat16), w1e_ref[...],
                preferred_element_type=jnp.float32) + b1e_ref[...]
    h = jnp.maximum(h, 0.0) * bna_s_ref[...] + bna_b_ref[...]   # ReLU, BN; Dropout=id

    h = jnp.dot(h.astype(jnp.bfloat16), w2_ref[...],
                preferred_element_type=jnp.float32) + b2_ref[...]
    h = jnp.maximum(h, 0.0) * bnb_s_ref[...] + bnb_b_ref[...]

    h = jnp.dot(h.astype(jnp.bfloat16), w3_ref[...],
                preferred_element_type=jnp.float32) + b3_ref[...]
    h = jnp.maximum(h, 0.0) * bnc_s_ref[...] + bnc_b_ref[...]

    o_ref[...] = jnp.dot(h.astype(jnp.bfloat16), w4_ref[...],
                         preferred_element_type=jnp.float32) + b4_ref[...]


# ----------------------------------------------------------------------------
# Wrapper
# ----------------------------------------------------------------------------
@functools.partial(jax.jit, static_argnames=("out_features",))
def cnn_forward(x, kp, *, out_features):
    N, C, L = x.shape
    CW = kp["w1e"].shape[0]
    H1p = kp["b1e"].shape[1]
    H2p = kp["b2"].shape[1]
    H3p = kp["b3"].shape[1]
    Op = kp["b4"].shape[1]
    assert C * L <= CW

    # batch tiling: 8-row tiles minimum, capped at 256 (fills MXU rows when
    # batching); weights stay VMEM-resident across tiles.
    bm = min(256, _ru(N, 8))
    Npad = _ru(N, bm)

    x2 = x.reshape(N, C * L).astype(jnp.float32)
    x2 = jnp.pad(x2, ((0, Npad - N), (0, CW - C * L)))

    def res(shape):  # resident (constant-index) operand
        return pl.BlockSpec(shape, lambda i: (0, 0))

    out = pl.pallas_call(
        cnn_fused_kernel,
        out_shape=jax.ShapeDtypeStruct((Npad, Op), jnp.float32),
        grid=(Npad // bm,),
        in_specs=[
            pl.BlockSpec((bm, CW), lambda i: (i, 0)),   # x (batch tiles)
            res((11, CW)),                              # per-lane conv params
            res((CW, H1p)),                             # fused W1 (bf16)
            res((1, H1p)), res((1, H1p)), res((1, H1p)),
            res((H1p, H2p)), res((1, H2p)), res((1, H2p)), res((1, H2p)),
            res((H2p, H3p)), res((1, H3p)), res((1, H3p)), res((1, H3p)),
            res((H3p, Op)), res((1, Op)),
        ],
        out_specs=pl.BlockSpec((bm, Op), lambda i: (i, 0)),
        compiler_params=pltpu.CompilerParams(
            dimension_semantics=("parallel",)),
    )(x2, kp["cp"], kp["w1e"], kp["b1e"], kp["bna_s"], kp["bna_b"],
      kp["W2"], kp["b2"], kp["bnb_s"], kp["bnb_b"],
      kp["W3"], kp["b3"], kp["bnc_s"], kp["bnc_b"],
      kp["W4"], kp["b4"])
    return out[:N, :out_features]


# ----------------------------------------------------------------------------
# Deterministic "natural" parameters (synthetic; eval-mode BN pre-folded)
# ----------------------------------------------------------------------------
def init_params(key, C, O, L, H1=288, H2=471, H3=300, eps=1e-5):
    L1 = L - 1
    P1 = L1 // 5
    P2 = P1 // 3
    F = C * P2
    assert F == int(C * (O - 1) / 15), \
        "sequence length must satisfy the module's flatten-size constraint"

    keys = iter(jax.random.split(key, 48))
    nxt = lambda: next(keys)

    def bn_fold(n):
        gamma = 1.0 + 0.1 * jax.random.normal(nxt(), (n,), jnp.float32)
        beta = 0.1 * jax.random.normal(nxt(), (n,), jnp.float32)
        mean = 0.1 * jax.random.normal(nxt(), (n,), jnp.float32)
        var = 0.5 + jax.random.uniform(nxt(), (n,), jnp.float32)
        scale = gamma / jnp.sqrt(var + eps)
        return scale, beta - mean * scale

    def linear(fan_in, fan_out):
        bound = 1.0 / float(fan_in) ** 0.5
        W = jax.random.uniform(nxt(), (fan_in, fan_out), jnp.float32, -bound, bound)
        b = jax.random.uniform(nxt(), (fan_out,), jnp.float32, -bound, bound)
        return W, b

    p = {}
    p["bn1_s"], p["bn1_b"] = bn_fold(C)
    p["conv1_w"] = 0.5 * jax.random.normal(nxt(), (C, 2), jnp.float32)
    p["conv1_b"] = 0.1 * jax.random.normal(nxt(), (C,), jnp.float32)
    p["bn2_s"], p["bn2_b"] = bn_fold(C)
    p["conv2_w"] = 0.5 * jax.random.normal(nxt(), (C, 3), jnp.float32)
    p["conv2_b"] = 0.1 * jax.random.normal(nxt(), (C,), jnp.float32)
    p["bn0_s"], p["bn0_b"] = bn_fold(F)
    p["W1"], p["b1"] = linear(F, H1)
    p["bna_s"], p["bna_b"] = bn_fold(H1)
    p["W2"], p["b2"] = linear(H1, H2)
    p["bnb_s"], p["bnb_b"] = bn_fold(H2)
    p["W3"], p["b3"] = linear(H2, H3)
    p["bnc_s"], p["bnc_b"] = bn_fold(H3)
    p["W4"], p["b4"] = linear(H3, O)
    return p


# ----------------------------------------------------------------------------
# One-time packing into the kernel's operand layout (channel-contiguous
# per-lane conv params with boundary masks folded into the conv2 taps,
# lane-padded bf16 MLP weights, lane-dilated BN0+Linear1 fusion).
# ----------------------------------------------------------------------------
def pack_params(p, *, seq_len, lane=128):
    L = seq_len
    L1 = L - 1
    P1 = L1 // 5
    P2 = P1 // 3
    C = p["bn1_s"].shape[0]
    F, H1 = p["W1"].shape
    H2 = p["W2"].shape[1]
    H3 = p["W3"].shape[1]
    O = p["W4"].shape[1]
    assert F == C * P2

    ru = lambda n: ((n + lane - 1) // lane) * lane
    CW, H1p, H2p, H3p, Op = ru(C * L), ru(H1), ru(H2), ru(H3), ru(O)

    def tile_c(v):   # (C,) -> per-lane (CW,): channel c tiled over its L lanes
        return jnp.pad(jnp.repeat(v.astype(jnp.float32), L), (0, CW - C * L))

    # channel-relative lane index; boundary masks for the 'same' conv2 padding
    rel = jnp.pad(jnp.tile(jnp.arange(L), C), (0, CW - C * L), constant_values=L)
    mask_l = (rel >= 5).astype(jnp.float32)                 # has a left pooled neighbour
    mask_r = (rel <= 5 * P1 - 10).astype(jnp.float32)       # has a right pooled neighbour

    cp = jnp.stack([
        tile_c(p["bn1_s"]), tile_c(p["bn1_b"]),
        tile_c(p["conv1_w"][:, 0]), tile_c(p["conv1_w"][:, 1]), tile_c(p["conv1_b"]),
        tile_c(p["bn2_s"]), tile_c(p["bn2_b"]),
        tile_c(p["conv2_w"][:, 0]) * mask_l, tile_c(p["conv2_w"][:, 1]),
        tile_c(p["conv2_w"][:, 2]) * mask_r, tile_c(p["conv2_b"]),
    ])                                                      # (11, CW)

    def pad_mat(W, r, c):
        return jnp.pad(W, ((0, r - W.shape[0]), (0, c - W.shape[1])))

    def pad_row(v, n):
        return jnp.pad(v, (0, n - v.shape[0])).reshape(1, n).astype(jnp.float32)

    # fold BatchNorm1d(F) into Linear1; place rows at lanes c*L + 15*t (bf16)
    sW = pad_mat(p["bn0_s"][:, None] * p["W1"], F, H1p).reshape(C, P2, H1p)
    w1e = jnp.zeros((C, L, H1p), jnp.float32)
    w1e = w1e.at[:, 15 * jnp.arange(P2), :].set(sW)
    w1e = pad_mat(w1e.reshape(C * L, H1p), CW, H1p).astype(jnp.bfloat16)
    b1e = pad_row(p["b1"] + p["bn0_b"] @ p["W1"], H1p)

    return dict(
        cp=cp, w1e=w1e, b1e=b1e,
        bna_s=pad_row(p["bna_s"], H1p), bna_b=pad_row(p["bna_b"], H1p),
        W2=pad_mat(p["W2"], H1p, H2p).astype(jnp.bfloat16), b2=pad_row(p["b2"], H2p),
        bnb_s=pad_row(p["bnb_s"], H2p), bnb_b=pad_row(p["bnb_b"], H2p),
        W3=pad_mat(p["W3"], H2p, H3p).astype(jnp.bfloat16), b3=pad_row(p["b3"], H3p),
        bnc_s=pad_row(p["bnc_s"], H3p), bnc_b=pad_row(p["bnc_b"], H3p),
        W4=pad_mat(p["W4"], H3p, Op).astype(jnp.bfloat16), b4=pad_row(p["b4"], Op),
    )


# ----------------------------------------------------------------------------
# Pure-JAX reference (PyTorch eval semantics; mirrors the kernel's bf16 MXU
# operand rounding for all four Linear layers).
# ----------------------------------------------------------------------------
def reference_forward(x, p):
    N, C, L = x.shape
    L1 = L - 1
    P1 = L1 // 5
    P2 = P1 // 3

    def bf16_dot(a, w):
        return jnp.dot(a.astype(jnp.bfloat16), w.astype(jnp.bfloat16),
                       preferred_element_type=jnp.float32)

    per_c = lambda v: v[None, :, None]
    h = x * per_c(p["bn1_s"]) + per_c(p["bn1_b"])
    y = (h[:, :, :L1] * per_c(p["conv1_w"][:, 0])
         + h[:, :, 1:] * per_c(p["conv1_w"][:, 1]) + per_c(p["conv1_b"]))
    y = y[:, :, :5 * P1].reshape(N, C, P1, 5).max(-1)
    y = y * per_c(p["bn2_s"]) + per_c(p["bn2_b"])
    yp = jnp.pad(y, ((0, 0), (0, 0), (1, 1)))
    y2 = (yp[:, :, :-2] * per_c(p["conv2_w"][:, 0])
          + yp[:, :, 1:-1] * per_c(p["conv2_w"][:, 1])
          + yp[:, :, 2:] * per_c(p["conv2_w"][:, 2]) + per_c(p["conv2_b"]))
    y2 = y2[:, :, :3 * P2].reshape(N, C, P2, 3).max(-1)

    h = y2.reshape(N, C * P2)
    h = h * p["bn0_s"] + p["bn0_b"]
    h = jnp.maximum(bf16_dot(h, p["W1"]) + p["b1"], 0.0) * p["bna_s"] + p["bna_b"]
    h = jnp.maximum(bf16_dot(h, p["W2"]) + p["b2"], 0.0) * p["bnb_s"] + p["bnb_b"]
    h = jnp.maximum(bf16_dot(h, p["W3"]) + p["b3"], 0.0) * p["bnc_s"] + p["bnc_b"]
    return bf16_dot(h, p["W4"]) + p["b4"]


if __name__ == "__main__":
    key = jax.random.PRNGKey(0)
    N = 2                        # batch
    C = 4                        # input_features (channels)
    O = 31                       # output_features
    L = O                        # sequence length -> flatten size = C*(O-1)/15

    kx, kw = jax.random.split(key)
    x = jax.random.normal(kx, (N, C, L), dtype=jnp.float32)
    params = init_params(kw, C, O, L)
    packed = pack_params(params, seq_len=L)

    out = cnn_forward(x, packed, out_features=O)
    out = jax.block_until_ready(out)

    ref = reference_forward(x, params)
    assert out.shape == (N, O), out.shape
    max_err = float(jnp.max(jnp.abs(out - ref)))
    assert jnp.allclose(out, ref, atol=2e-2, rtol=2e-2), max_err
    print("KERNEL_OK")
</pallas_src>

<mosaic_0001>
module attributes {stable_mosaic.version = 11 : i64} {
  func.func @cnn_fused_kernel(%arg0: i32, %arg1: memref<8x128xf32, #tpu.memory_space<vmem>>, %arg2: memref<11x128xf32, #tpu.memory_space<vmem>>, %arg3: memref<128x384xbf16, #tpu.memory_space<vmem>>, %arg4: memref<1x384xf32, #tpu.memory_space<vmem>>, %arg5: memref<1x384xf32, #tpu.memory_space<vmem>>, %arg6: memref<1x384xf32, #tpu.memory_space<vmem>>, %arg7: memref<384x512xbf16, #tpu.memory_space<vmem>>, %arg8: memref<1x512xf32, #tpu.memory_space<vmem>>, %arg9: memref<1x512xf32, #tpu.memory_space<vmem>>, %arg10: memref<1x512xf32, #tpu.memory_space<vmem>>, %arg11: memref<512x384xbf16, #tpu.memory_space<vmem>>, %arg12: memref<1x384xf32, #tpu.memory_space<vmem>>, %arg13: memref<1x384xf32, #tpu.memory_space<vmem>>, %arg14: memref<1x384xf32, #tpu.memory_space<vmem>>, %arg15: memref<384x128xbf16, #tpu.memory_space<vmem>>, %arg16: memref<1x128xf32, #tpu.memory_space<vmem>>, %arg17: memref<8x128xf32, #tpu.memory_space<vmem>>) attributes {dimension_semantics = [#tpu.dimension_semantics<parallel>], iteration_bounds = array<i64: 1>, scalar_prefetch = 0 : i64, scratch_operands = 0 : i64, tpu.core_type = #tpu.core_type<tc>, window_params = [{transform_indices = @transform_0, window_bounds = array<i64: 8, 128>}, {pipeline_mode = #tpu.pipeline_mode<synchronous>, transform_indices = @transform_1, window_bounds = array<i64: 11, 128>}, {pipeline_mode = #tpu.pipeline_mode<synchronous>, transform_indices = @transform_2, window_bounds = array<i64: 128, 384>}, {pipeline_mode = #tpu.pipeline_mode<synchronous>, transform_indices = @transform_3, window_bounds = array<i64: 1, 384>}, {pipeline_mode = #tpu.pipeline_mode<synchronous>, transform_indices = @transform_4, window_bounds = array<i64: 1, 384>}, {pipeline_mode = #tpu.pipeline_mode<synchronous>, transform_indices = @transform_5, window_bounds = array<i64: 1, 384>}, {pipeline_mode = #tpu.pipeline_mode<synchronous>, transform_indices = @transform_6, window_bounds = array<i64: 384, 512>}, {pipeline_mode = #tpu.pipeline_mode<synchronous>, transform_indices = @transform_7, window_bounds = array<i64: 1, 512>}, {pipeline_mode = #tpu.pipeline_mode<synchronous>, transform_indices = @transform_8, window_bounds = array<i64: 1, 512>}, {pipeline_mode = #tpu.pipeline_mode<synchronous>, transform_indices = @transform_9, window_bounds = array<i64: 1, 512>}, {pipeline_mode = #tpu.pipeline_mode<synchronous>, transform_indices = @transform_10, window_bounds = array<i64: 512, 384>}, {pipeline_mode = #tpu.pipeline_mode<synchronous>, transform_indices = @transform_11, window_bounds = array<i64: 1, 384>}, {pipeline_mode = #tpu.pipeline_mode<synchronous>, transform_indices = @transform_12, window_bounds = array<i64: 1, 384>}, {pipeline_mode = #tpu.pipeline_mode<synchronous>, transform_indices = @transform_13, window_bounds = array<i64: 1, 384>}, {pipeline_mode = #tpu.pipeline_mode<synchronous>, transform_indices = @transform_14, window_bounds = array<i64: 384, 128>}, {pipeline_mode = #tpu.pipeline_mode<synchronous>, transform_indices = @transform_15, window_bounds = array<i64: 1, 128>}, {transform_indices = @transform_16, window_bounds = array<i64: 8, 128>}]} {
    %c0 = arith.constant 0 : index
    %c0_0 = arith.constant 0 : index
    %0 = vector.load %arg2[%c0, %c0_0] : memref<11x128xf32, #tpu.memory_space<vmem>>, vector<11x128xf32>
    %1 = vector.extract_strided_slice %0 {offsets = [0, 0], sizes = [1, 128], strides = [1, 1]} : vector<11x128xf32> to vector<1x128xf32>
    %2 = vector.extract_strided_slice %0 {offsets = [1, 0], sizes = [1, 128], strides = [1, 1]} : vector<11x128xf32> to vector<1x128xf32>
    %3 = vector.extract_strided_slice %0 {offsets = [2, 0], sizes = [1, 128], strides = [1, 1]} : vector<11x128xf32> to vector<1x128xf32>
    %4 = vector.extract_strided_slice %0 {offsets = [3, 0], sizes = [1, 128], strides = [1, 1]} : vector<11x128xf32> to vector<1x128xf32>
    %5 = vector.extract_strided_slice %0 {offsets = [4, 0], sizes = [1, 128], strides = [1, 1]} : vector<11x128xf32> to vector<1x128xf32>
    %6 = vector.extract_strided_slice %0 {offsets = [5, 0], sizes = [1, 128], strides = [1, 1]} : vector<11x128xf32> to vector<1x128xf32>
    %7 = vector.extract_strided_slice %0 {offsets = [6, 0], sizes = [1, 128], strides = [1, 1]} : vector<11x128xf32> to vector<1x128xf32>
    %8 = vector.extract_strided_slice %0 {offsets = [7, 0], sizes = [1, 128], strides = [1, 1]} : vector<11x128xf32> to vector<1x128xf32>
    %9 = vector.extract_strided_slice %0 {offsets = [8, 0], sizes = [1, 128], strides = [1, 1]} : vector<11x128xf32> to vector<1x128xf32>
    %10 = vector.extract_strided_slice %0 {offsets = [9, 0], sizes = [1, 128], strides = [1, 1]} : vector<11x128xf32> to vector<1x128xf32>
    %11 = vector.extract_strided_slice %0 {offsets = [10, 0], sizes = [1, 128], strides = [1, 1]} : vector<11x128xf32> to vector<1x128xf32>
    %c0_1 = arith.constant 0 : index
    %c0_2 = arith.constant 0 : index
    %12 = vector.load %arg1[%c0_1, %c0_2] : memref<8x128xf32, #tpu.memory_space<vmem>>, vector<8x128xf32>
    %13 = vector.broadcast %1 : vector<1x128xf32> to vector<8x128xf32>
    %14 = arith.mulf %12, %13 : vector<8x128xf32>
    %15 = vector.broadcast %2 : vector<1x128xf32> to vector<8x128xf32>
    %16 = arith.addf %14, %15 : vector<8x128xf32>
    %17 = vector.broadcast %3 : vector<1x128xf32> to vector<8x128xf32>
    %18 = arith.mulf %16, %17 : vector<8x128xf32>
    %c127_i32 = arith.constant 127 : i32
    %19 = tpu.dynamic_rotate %16 by %c127_i32 dim 1 : vector<8x128xf32>, i32 -> vector<8x128xf32>
    %20 = vector.broadcast %4 : vector<1x128xf32> to vector<8x128xf32>
    %21 = arith.mulf %19, %20 : vector<8x128xf32>
    %22 = arith.addf %18, %21 : vector<8x128xf32>
    %23 = vector.broadcast %5 : vector<1x128xf32> to vector<8x128xf32>
    %24 = arith.addf %22, %23 : vector<8x128xf32>
    %c127_i32_3 = arith.constant 127 : i32
    %25 = tpu.dynamic_rotate %24 by %c127_i32_3 dim 1 : vector<8x128xf32>, i32 -> vector<8x128xf32>
    %26 = arith.maximumf %24, %25 : vector<8x128xf32>
    %c126_i32 = arith.constant 126 : i32
    %27 = tpu.dynamic_rotate %24 by %c126_i32 dim 1 : vector<8x128xf32>, i32 -> vector<8x128xf32>
    %c125_i32 = arith.constant 125 : i32
    %28 = tpu.dynamic_rotate %24 by %c125_i32 dim 1 : vector<8x128xf32>, i32 -> vector<8x128xf32>
    %29 = arith.maximumf %27, %28 : vector<8x128xf32>
    %30 = arith.maximumf %26, %29 : vector<8x128xf32>
    %c124_i32 = arith.constant 124 : i32
    %31 = tpu.dynamic_rotate %24 by %c124_i32 dim 1 : vector<8x128xf32>, i32 -> vector<8x128xf32>
    %32 = arith.maximumf %30, %31 : vector<8x128xf32>
    %33 = vector.broadcast %6 : vector<1x128xf32> to vector<8x128xf32>
    %34 = arith.mulf %32, %33 : vector<8x128xf32>
    %35 = vector.broadcast %7 : vector<1x128xf32> to vector<8x128xf32>
    %36 = arith.addf %34, %35 : vector<8x128xf32>
    %c5_i32 = arith.constant 5 : i32
    %37 = tpu.dynamic_rotate %36 by %c5_i32 dim 1 : vector<8x128xf32>, i32 -> vector<8x128xf32>
    %38 = vector.broadcast %8 : vector<1x128xf32> to vector<8x128xf32>
    %39 = arith.mulf %37, %38 : vector<8x128xf32>
    %40 = vector.broadcast %9 : vector<1x128xf32> to vector<8x128xf32>
    %41 = arith.mulf %36, %40 : vector<8x128xf32>
    %42 = arith.addf %39, %41 : vector<8x128xf32>
    %c123_i32 = arith.constant 123 : i32
    %43 = tpu.dynamic_rotate %36 by %c123_i32 dim 1 : vector<8x128xf32>, i32 -> vector<8x128xf32>
    %44 = vector.broadcast %10 : vector<1x128xf32> to vector<8x128xf32>
    %45 = arith.mulf %43, %44 : vector<8x128xf32>
    %46 = arith.addf %42, %45 : vector<8x128xf32>
    %47 = vector.broadcast %11 : vector<1x128xf32> to vector<8x128xf32>
    %48 = arith.addf %46, %47 : vector<8x128xf32>
    %c123_i32_4 = arith.constant 123 : i32
    %49 = tpu.dynamic_rotate %48 by %c123_i32_4 dim 1 : vector<8x128xf32>, i32 -> vector<8x128xf32>
    %50 = arith.maximumf %48, %49 : vector<8x128xf32>
    %c118_i32 = arith.constant 118 : i32
    %51 = tpu.dynamic_rotate %48 by %c118_i32 dim 1 : vector<8x128xf32>, i32 -> vector<8x128xf32>
    %52 = arith.maximumf %50, %51 : vector<8x128xf32>
    %53 = arith.truncf %52 : vector<8x128xf32> to vector<8x128xbf16>
    %c0_5 = arith.constant 0 : index
    %c0_6 = arith.constant 0 : index
    %54 = vector.load %arg3[%c0_5, %c0_6] : memref<128x384xbf16, #tpu.memory_space<vmem>>, vector<128x384xbf16>
    %cst = arith.constant dense<0.000000e+00> : vector<8x384xf32>
    %55 = tpu.matmul %53, %54, %cst {dimension_numbers = #tpu.dot_dimension_numbers<[1], [0], [0], [1], [0, 0, 1, 1], [], []>} : vector<8x128xbf16>, vector<128x384xbf16>, vector<8x384xf32> -> vector<8x384xf32>
    %c0_7 = arith.constant 0 : index
    %c0_8 = arith.constant 0 : index
    %56 = vector.load %arg4[%c0_7, %c0_8] : memref<1x384xf32, #tpu.memory_space<vmem>>, vector<1x384xf32>
    %57 = vector.broadcast %56 : vector<1x384xf32> to vector<8x384xf32>
    %58 = arith.addf %55, %57 : vector<8x384xf32>
    %cst_9 = arith.constant 0.000000e+00 : f32
    %59 = vector.broadcast %cst_9 : f32 to vector<8x384xf32>
    %60 = arith.maximumf %58, %59 : vector<8x384xf32>
    %c0_10 = arith.constant 0 : index
    %c0_11 = arith.constant 0 : index
    %61 = vector.load %arg5[%c0_10, %c0_11] : memref<1x384xf32, #tpu.memory_space<vmem>>, vector<1x384xf32>
    %62 = vector.broadcast %61 : vector<1x384xf32> to vector<8x384xf32>
    %63 = arith.mulf %60, %62 : vector<8x384xf32>
    %c0_12 = arith.constant 0 : index
    %c0_13 = arith.constant 0 : index
    %64 = vector.load %arg6[%c0_12, %c0_13] : memref<1x384xf32, #tpu.memory_space<vmem>>, vector<1x384xf32>
    %65 = vector.broadcast %64 : vector<1x384xf32> to vector<8x384xf32>
    %66 = arith.addf %63, %65 : vector<8x384xf32>
    %67 = arith.truncf %66 : vector<8x384xf32> to vector<8x384xbf16>
    %c0_14 = arith.constant 0 : index
    %c0_15 = arith.constant 0 : index
    %68 = vector.load %arg7[%c0_14, %c0_15] : memref<384x512xbf16, #tpu.memory_space<vmem>>, vector<384x512xbf16>
    %cst_16 = arith.constant dense<0.000000e+00> : vector<8x512xf32>
    %69 = tpu.matmul %67, %68, %cst_16 {dimension_numbers = #tpu.dot_dimension_numbers<[1], [0], [0], [1], [0, 0, 1, 1], [], []>} : vector<8x384xbf16>, vector<384x512xbf16>, vector<8x512xf32> -> vector<8x512xf32>
    %c0_17 = arith.constant 0 : index
    %c0_18 = arith.constant 0 : index
    %70 = vector.load %arg8[%c0_17, %c0_18] : memref<1x512xf32, #tpu.memory_space<vmem>>, vector<1x512xf32>
    %71 = vector.broadcast %70 : vector<1x512xf32> to vector<8x512xf32>
    %72 = arith.addf %69, %71 : vector<8x512xf32>
    %cst_19 = arith.constant 0.000000e+00 : f32
    %73 = vector.broadcast %cst_19 : f32 to vector<8x512xf32>
    %74 = arith.maximumf %72, %73 : vector<8x512xf32>
    %c0_20 = arith.constant 0 : index
    %c0_21 = arith.constant 0 : index
    %75 = vector.load %arg9[%c0_20, %c0_21] : memref<1x512xf32, #tpu.memory_space<vmem>>, vector<1x512xf32>
    %76 = vector.broadcast %75 : vector<1x512xf32> to vector<8x512xf32>
    %77 = arith.mulf %74, %76 : vector<8x512xf32>
    %c0_22 = arith.constant 0 : index
    %c0_23 = arith.constant 0 : index
    %78 = vector.load %arg10[%c0_22, %c0_23] : memref<1x512xf32, #tpu.memory_space<vmem>>, vector<1x512xf32>
    %79 = vector.broadcast %78 : vector<1x512xf32> to vector<8x512xf32>
    %80 = arith.addf %77, %79 : vector<8x512xf32>
    %81 = arith.truncf %80 : vector<8x512xf32> to vector<8x512xbf16>
    %c0_24 = arith.constant 0 : index
    %c0_25 = arith.constant 0 : index
    %82 = vector.load %arg11[%c0_24, %c0_25] : memref<512x384xbf16, #tpu.memory_space<vmem>>, vector<512x384xbf16>
    %cst_26 = arith.constant dense<0.000000e+00> : vector<8x384xf32>
    %83 = tpu.matmul %81, %82, %cst_26 {dimension_numbers = #tpu.dot_dimension_numbers<[1], [0], [0], [1], [0, 0, 1, 1], [], []>} : vector<8x512xbf16>, vector<512x384xbf16>, vector<8x384xf32> -> vector<8x384xf32>
    %c0_27 = arith.constant 0 : index
    %c0_28 = arith.constant 0 : index
    %84 = vector.load %arg12[%c0_27, %c0_28] : memref<1x384xf32, #tpu.memory_space<vmem>>, vector<1x384xf32>
    %85 = vector.broadcast %84 : vector<1x384xf32> to vector<8x384xf32>
    %86 = arith.addf %83, %85 : vector<8x384xf32>
    %cst_29 = arith.constant 0.000000e+00 : f32
    %87 = vector.broadcast %cst_29 : f32 to vector<8x384xf32>
    %88 = arith.maximumf %86, %87 : vector<8x384xf32>
    %c0_30 = arith.constant 0 : index
    %c0_31 = arith.constant 0 : index
    %89 = vector.load %arg13[%c0_30, %c0_31] : memref<1x384xf32, #tpu.memory_space<vmem>>, vector<1x384xf32>
    %90 = vector.broadcast %89 : vector<1x384xf32> to vector<8x384xf32>
    %91 = arith.mulf %88, %90 : vector<8x384xf32>
    %c0_32 = arith.constant 0 : index
    %c0_33 = arith.constant 0 : index
    %92 = vector.load %arg14[%c0_32, %c0_33] : memref<1x384xf32, #tpu.memory_space<vmem>>, vector<1x384xf32>
    %93 = vector.broadcast %92 : vector<1x384xf32> to vector<8x384xf32>
    %94 = arith.addf %91, %93 : vector<8x384xf32>
    %95 = arith.truncf %94 : vector<8x384xf32> to vector<8x384xbf16>
    %c0_34 = arith.constant 0 : index
    %c0_35 = arith.constant 0 : index
    %96 = vector.load %arg15[%c0_34, %c0_35] : memref<384x128xbf16, #tpu.memory_space<vmem>>, vector<384x128xbf16>
    %cst_36 = arith.constant dense<0.000000e+00> : vector<8x128xf32>
    %97 = tpu.matmul %95, %96, %cst_36 {dimension_numbers = #tpu.dot_dimension_numbers<[1], [0], [0], [1], [0, 0, 1, 1], [], []>} : vector<8x384xbf16>, vector<384x128xbf16>, vector<8x128xf32> -> vector<8x128xf32>
    %c0_37 = arith.constant 0 : index
    %c0_38 = arith.constant 0 : index
    %98 = vector.load %arg16[%c0_37, %c0_38] : memref<1x128xf32, #tpu.memory_space<vmem>>, vector<1x128xf32>
    %99 = vector.broadcast %98 : vector<1x128xf32> to vector<8x128xf32>
    %100 = arith.addf %97, %99 : vector<8x128xf32>
    %c0_39 = arith.constant 0 : index
    %c0_40 = arith.constant 0 : index
    %101 = vector.load %arg17[%c0_39, %c0_40] : memref<8x128xf32, #tpu.memory_space<vmem>>, vector<8x128xf32>
    tpu.vector_store %arg17[%c0_39, %c0_40], %100 {strides = array<i32>} : memref<8x128xf32, #tpu.memory_space<vmem>>, vector<8x128xf32>,
    return
  }
  func.func @transform_0(%arg0: i32) -> (i32, i32) {
    %c0_i32 = arith.constant 0 : i32
    %c0_i32_0 = arith.constant 0 : i32
    return %arg0, %c0_i32 : i32, i32
  }
  func.func @transform_1(%arg0: i32) -> (i32, i32) {
    %c0_i32 = arith.constant 0 : i32
    %c0_i32_0 = arith.constant 0 : i32
    %c0_i32_1 = arith.constant 0 : i32
    return %c0_i32, %c0_i32_0 : i32, i32
  }
  func.func @transform_2(%arg0: i32) -> (i32, i32) {
    %c0_i32 = arith.constant 0 : i32
    %c0_i32_0 = arith.constant 0 : i32
    %c0_i32_1 = arith.constant 0 : i32
    return %c0_i32, %c0_i32_0 : i32, i32
  }
  func.func @transform_3(%arg0: i32) -> (i32, i32) {
    %c0_i32 = arith.constant 0 : i32
    %c0_i32_0 = arith.constant 0 : i32
    %c0_i32_1 = arith.constant 0 : i32
    return %c0_i32, %c0_i32_0 : i32, i32
  }
  func.func @transform_4(%arg0: i32) -> (i32, i32) {
    %c0_i32 = arith.constant 0 : i32
    %c0_i32_0 = arith.constant 0 : i32
    %c0_i32_1 = arith.constant 0 : i32
    return %c0_i32, %c0_i32_0 : i32, i32
  }
  func.func @transform_5(%arg0: i32) -> (i32, i32) {
    %c0_i32 = arith.constant 0 : i32
    %c0_i32_0 = arith.constant 0 : i32
    %c0_i32_1 = arith.constant 0 : i32
    return %c0_i32, %c0_i32_0 : i32, i32
  }
  func.func @transform_6(%arg0: i32) -> (i32, i32) {
    %c0_i32 = arith.constant 0 : i32
    %c0_i32_0 = arith.constant 0 : i32
    %c0_i32_1 = arith.constant 0 : i32
    return %c0_i32, %c0_i32_0 : i32, i32
  }
  func.func @transform_7(%arg0: i32) -> (i32, i32) {
    %c0_i32 = arith.constant 0 : i32
    %c0_i32_0 = arith.constant 0 : i32
    %c0_i32_1 = arith.constant 0 : i32
    return %c0_i32, %c0_i32_0 : i32, i32
  }
  func.func @transform_8(%arg0: i32) -> (i32, i32) {
    %c0_i32 = arith.constant 0 : i32
    %c0_i32_0 = arith.constant 0 : i32
    %c0_i32_1 = arith.constant 0 : i32
    return %c0_i32, %c0_i32_0 : i32, i32
  }
  func.func @transform_9(%arg0: i32) -> (i32, i32) {
    %c0_i32 = arith.constant 0 : i32
    %c0_i32_0 = arith.constant 0 : i32
    %c0_i32_1 = arith.constant 0 : i32
    return %c0_i32, %c0_i32_0 : i32, i32
  }
  func.func @transform_10(%arg0: i32) -> (i32, i32) {
    %c0_i32 = arith.constant 0 : i32
    %c0_i32_0 = arith.constant 0 : i32
    %c0_i32_1 = arith.constant 0 : i32
    return %c0_i32, %c0_i32_0 : i32, i32
  }
  func.func @transform_11(%arg0: i32) -> (i32, i32) {
    %c0_i32 = arith.constant 0 : i32
    %c0_i32_0 = arith.constant 0 : i32
    %c0_i32_1 = arith.constant 0 : i32
    return %c0_i32, %c0_i32_0 : i32, i32
  }
  func.func @transform_12(%arg0: i32) -> (i32, i32) {
    %c0_i32 = arith.constant 0 : i32
    %c0_i32_0 = arith.constant 0 : i32
    %c0_i32_1 = arith.constant 0 : i32
    return %c0_i32, %c0_i32_0 : i32, i32
  }
  func.func @transform_13(%arg0: i32) -> (i32, i32) {
    %c0_i32 = arith.constant 0 : i32
    %c0_i32_0 = arith.constant 0 : i32
    %c0_i32_1 = arith.constant 0 : i32
    return %c0_i32, %c0_i32_0 : i32, i32
  }
  func.func @transform_14(%arg0: i32) -> (i32, i32) {
    %c0_i32 = arith.constant 0 : i32
    %c0_i32_0 = arith.constant 0 : i32
    %c0_i32_1 = arith.constant 0 : i32
    return %c0_i32, %c0_i32_0 : i32, i32
  }
  func.func @transform_15(%arg0: i32) -> (i32, i32) {
    %c0_i32 = arith.constant 0 : i32
    %c0_i32_0 = arith.constant 0 : i32
    %c0_i32_1 = arith.constant 0 : i32
    return %c0_i32, %c0_i32_0 : i32, i32
  }
  func.func @transform_16(%arg0: i32) -> (i32, i32) {
    %c0_i32 = arith.constant 0 : i32
    %c0_i32_0 = arith.constant 0 : i32
    return %arg0, %c0_i32 : i32, i32
  }
}

</mosaic_0001>

<bundles_post_ra>
// kernel: cnn_forward.1
= control target key start
LH: loop header
LB: loop body
LE: loop exit
PB: predicated region body
PF: predicated region fallthrough
CT: control target
= control target key end

     0   :  { %s3631_s0 = inlined_call_operand.vmem [shape: f32[8,128], index: 0, kind: input, shape index: {}]   ;;  %s3632_s1 = inlined_call_operand.vmem [shape: f32[11,128], index: 1, kind: input, shape index: {}]   ;;  %s3633_s2 = inlined_call_operand.hbm [shape: bf16[128,384], index: 2, kind: input, shape index: {}]   ;;  %s3634_s3 = inlined_call_operand.vmem [shape: f32[1,384], index: 3, kind: input, shape index: {}]   ;;  %s3635_s4 = inlined_call_operand.vmem [shape: f32[1,384], index: 4, kind: input, shape index: {}]   ;;  %s3636_s5 = inlined_call_operand.vmem [shape: f32[1,384], index: 5, kind: input, shape index: {}]   ;;  %s3637_s6 = inlined_call_operand.hbm [shape: bf16[384,512], index: 6, kind: input, shape index: {}]   ;;  %s3638_s7 = inlined_call_operand.vmem [shape: f32[1,512], index: 7, kind: input, shape index: {}]   ;;  %s3639_s8 = inlined_call_operand.vmem [shape: f32[1,512], index: 8, kind: input, shape index: {}]   ;;  %s3640_s9 = inlined_call_operand.vmem [shape: f32[1,512], index: 9, kind: input, shape index: {}]   ;;  %s3641_s10 = inlined_call_operand.hbm [shape: bf16[512,384], index: 10, kind: input, shape index: {}]   ;;  %s3642_s11 = inlined_call_operand.vmem [shape: f32[1,384], index: 11, kind: input, shape index: {}]   ;;  %s3643_s12 = inlined_call_operand.vmem [shape: f32[1,384], index: 12, kind: input, shape index: {}]   ;;  %s3644_s13 = inlined_call_operand.vmem [shape: f32[1,384], index: 13, kind: input, shape index: {}]   ;;  %s3645_s14 = inlined_call_operand.hbm [shape: bf16[384,128], index: 14, kind: input, shape index: {}]   ;;  %s3646_s15 = inlined_call_operand.vmem [shape: f32[1,128], index: 15, kind: input, shape index: {}]   ;;  %s3647_s16 = inlined_call_operand.vmem [shape: f32[8,128], index: 16, kind: output, shape index: {}]  }
   0x1   :  { %3648 = sst [smem:[#allocation12_spill]] %s3631_s0 }
   0x2   :  { %21 = vsyncpa [#allocation3], 0 }
   0x3   :  { %22 = vsyncpa [#allocation5], 0 }
   0x4   :  { %23 = vsyncpa [#allocation8], 0  ;;  %s3298_s21 = smov [#allocation4]   ;;  %s3204_s25 = scalar_lea.hbm %s3637_s6, 12288 }
   0x5   :  { %s51_s22 = sshll.u32 %s3298_s21, 4  ;;  %p3205_p0 = scmp.ne.s32.totalorder %s3637_s6, %s3204_s25  ;;  %s52_s22 = int_to_ptr.vmem [resolvable:$true] %s51_s22 }
   0x6   :  { %p3208_p1 = scmp.lt.u32.totalorder %s3204_s25, %s3637_s6 }
   0x8   :  { %p3210_p2 = pnand %p3208_p1, %p3205_p0 }
   0xa   :  { %3213 = shalt.err (!%p3210_p2)
}
   0xb   :  { %s3214_s30 = scalar_lea.vmem %s52_s22, 12288  ;;  %p3219_p4 = scmp.lt.s32.totalorder %s52_s22, %s52_s22 }
   0xc   :  { %p3215_p3 = scmp.ne.s32.totalorder %s52_s22, %s3214_s30  ;;  %p3220_p5 = scmp.lt.s32.totalorder %s3214_s30, %s3214_s30 }
   0xe   :  { %p3221_p6 = por %p3220_p5, %p3219_p4 }
  0x10   :  { %p3222_p7 = pnand %p3221_p6, %p3215_p3 }
  0x12   :  { %3225 = shalt.err (!%p3222_p7)
}
  0x13   :  { %s3299_s0 = smov 256   ;;  %s3300_s17 = smov 16  }
  0x14   :  { %57 = dma.hbm_to_vmem [thread:$0]  %s3637_s6, 12288, %s52_s22, [#allocation5], %s3299_s0, %s3299_s0, %s3300_s17  }
  0x15   :  { %s3301_s20 = smov [#allocation2]   ;;  %s3226_s25 = scalar_lea.hbm %s3633_s2, 3072 }
  0x16   :  { %s33_s21 = sshll.u32 %s3301_s20, 4  ;;  %p3227_p8 = scmp.ne.s32.totalorder %s3633_s2, %s3226_s25  ;;  %s34_s21 = int_to_ptr.vmem [resolvable:$true] %s33_s21 }
  0x17   :  { %p3230_p9 = scmp.lt.u32.totalorder %s3226_s25, %s3633_s2 }
  0x19   :  { %p3232_p10 = pnand %p3230_p9, %p3227_p8 }
  0x1b   :  { %3235 = shalt.err (!%p3232_p10)
}
  0x1c   :  { %s3236_s30 = scalar_lea.vmem %s34_s21, 3072  ;;  %p3241_p12 = scmp.lt.s32.totalorder %s34_s21, %s34_s21 }
  0x1d   :  { %p3237_p11 = scmp.ne.s32.totalorder %s34_s21, %s3236_s30  ;;  %p3242_p13 = scmp.lt.s32.totalorder %s3236_s30, %s3236_s30 }
  0x1f   :  { %p3243_p0 = por %p3242_p13, %p3241_p12 }
  0x21   :  { %p3244_p1 = pnand %p3243_p0, %p3237_p11 }
  0x23   :  { %3247 = shalt.err (!%p3244_p1)
}
  0x24   :  { %s3302_s6 = smov 192   ;;  %s3303_s22 = smov 12  }
  0x25   :  { %39 = dma.hbm_to_vmem [thread:$0]  %s3633_s2, 3072, %s34_s21, [#allocation3], %s3302_s6, %s3302_s6, %s3303_s22  }
  0x26   :  { %s3304_s18 = smov [#allocation6]   ;;  %s3305_s20 = smov [#allocation7]  }
  0x27   :  { %s69_s19 = sshll.u32 %s3304_s18, 4  ;;  %s87_s23 = sshll.u32 %s3305_s20, 4  ;;  %s70_s19 = int_to_ptr.vmem [resolvable:$true] %s69_s19  ;;  %s3427_s23 = int_to_ptr.vmem [resolvable:$true] %s87_s23 }
  0x28   :  { %s3248_s26 = scalar_lea.hbm %s3641_s10, 12288 }
  0x29   :  { %p3249_p2 = scmp.ne.s32.totalorder %s3641_s10, %s3248_s26  ;;  %p3252_p3 = scmp.lt.u32.totalorder %s3248_s26, %s3641_s10 }
  0x2b   :  { %p3254_p4 = pnand %p3252_p3, %p3249_p2 }
  0x2d   :  { %3257 = shalt.err (!%p3254_p4)
}
  0x2e   :  { %s3258_s2 = scalar_lea.vmem %s70_s19, 12288  ;;  %p3263_p6 = scmp.lt.s32.totalorder %s70_s19, %s70_s19 }
  0x2f   :  { %p3259_p5 = scmp.ne.s32.totalorder %s70_s19, %s3258_s2  ;;  %p3264_p7 = scmp.lt.s32.totalorder %s3258_s2, %s3258_s2 }
  0x31   :  { %p3265_p8 = por %p3264_p7, %p3263_p6 }
  0x33   :  { %p3266_p9 = pnand %p3265_p8, %p3259_p5 }
  0x35   :  { %3269 = shalt.err (!%p3266_p9)
}
  0x36   :  { %75 = dma.hbm_to_vmem [thread:$0]  %s3641_s10, 12288, %s70_s19, [#allocation5], %s3302_s6, %s3302_s6, %s3303_s22  }
  0x37   :  { %s3270_s20 = scalar_lea.hbm %s3645_s14, 3072 }
  0x38   :  { %p3271_p10 = scmp.ne.s32.totalorder %s3645_s14, %s3270_s20  ;;  %p3274_p11 = scmp.lt.u32.totalorder %s3270_s20, %s3645_s14 }
  0x3a   :  { %p3276_p12 = pnand %p3274_p11, %p3271_p10 }
  0x3c   :  { %3279 = shalt.err (!%p3276_p12)
}
  0x3d   :  { %s3280_s28 = scalar_lea.vmem %s3427_s23, 3072  ;;  %p3285_p0 = scmp.lt.s32.totalorder %s3427_s23, %s3427_s23 }
  0x3e   :  { %p3281_p13 = scmp.ne.s32.totalorder %s3427_s23, %s3280_s28  ;;  %p3286_p1 = scmp.lt.s32.totalorder %s3280_s28, %s3280_s28 }
  0x40   :  { %p3287_p2 = por %p3286_p1, %p3285_p0 }
  0x42   :  { %p3288_p3 = pnand %p3287_p2, %p3281_p13 }
  0x44   :  { %3291 = shalt.err (!%p3288_p3)
}
  0x45   :  { %s3306_s10 = smov 64   ;;  %s3307_s6 = smov 4  }
  0x46   :  { %93 = dma.hbm_to_vmem [thread:$0]  %s3645_s14, 3072, %s3427_s23, [#allocation8], %s3306_s10, %s3306_s10, %s3307_s6  }
  0x47   :  { %3292 = dma.done.wait [#allocation3], 3072  }
  0x48   :  { %3293 = vsyncadd [#allocation3], 4294964224 }
  0x49   :  { %3294 = dma.done.wait [#allocation5], 24576  }
  0x4a   :  { %3295 = vsyncadd [#allocation5], 4294942720 }
  0x4b   :  { %3296 = dma.done.wait [#allocation8], 3072  }
  0x4c   :  { %3297 = vsyncadd [#allocation8], 4294964224  ;;  %v112_v0 = vlaneseq  ;;  %v3469_v4 = vld [vmem:[%s3632_s1] sm:$0xff]  ;;  %s3649_s2 = sld [smem:[#allocation12_spill]]  ;;  %s3308_s21 = smov 127   ;;  %v3312_v36 = vmov 0.0  }
  0x4d   :  { %s3309_s0 = smov 126   ;;  %s3310_s17 = smov 125   ;;  %v2876_v33 = vld [vmem:[#allocation2 + $0x4] ss:$12 sps:$4 sm:$0xff]   ;;  %v2878_v34 = vld [vmem:[#allocation2] ss:$12 sps:$4 sm:$0xff]   ;;  %2798 = vmatprep.subr.bf16.mxu1 %v3312_v36 }
  0x4e   :  { %v3458_v1 = vshrl.u32 %v112_v0, 7  ;;  %s3311_s18 = smov 124   ;;  %v2879_v37 = vld [vmem:[#allocation2 + $0x8] ss:$12 sps:$4 sm:$0xff]   ;;  %372 = vmatprep.subr.bf16.mxu0 %v2876_v33  ;;  %v2882_v40 = vld [vmem:[#allocation2 + $0x18] ss:$12 sps:$4 sm:$0xff]  }
  0x4f   :  { %v2880_v38 = vld [vmem:[#allocation2 + $0x1c] ss:$12 sps:$4 sm:$0xff]   ;;  %373 = vmatpush1.bf16.msra.mxu0 %v2878_v34  ;;  %2799 = vmatpush3.bf16.msra.mxu1 %v2879_v37  ;;  %v2883_v41 = vld [vmem:[#allocation2 + $0x20] ss:$12 sps:$4 sm:$0xff]   ;;  %s3313_s20 = smov 123   ;;  %s3314_s24 = smov 5  }
  0x50   :  { %v3461_v2 = vsub.s32 0, %v3458_v1  ;;  %v3464_v3 = vsub.s32 1, %v3458_v1  ;;  %v3479_v10 = vsub.s32 2, %v3458_v1  ;;  %v3482_v11 = vsub.s32 3, %v3458_v1  ;;  %374 = vmatprep.subr.bf16.mxu0 %v2880_v38  ;;  %2800 = vmatprep.subr.bf16.mxu1 %v3312_v36  ;;  %v2884_v42 = vld [vmem:[#allocation2 + $0x34] ss:$12 sps:$4 sm:$0xff]  }
  0x51   :  { %v137_v14 = vsub.s32 4, %v3458_v1  ;;  %v154_v23 = vsub.s32 5, %v3458_v1  ;;  %v159_v27 = vsub.s32 6, %v3458_v1  ;;  %v2886_v43 = vld [vmem:[#allocation2 + $0x30] ss:$12 sps:$4 sm:$0xff]   ;;  %v166_v57 = vsub.s32 7, %v3458_v1 }
  0x52   :  { %v111_v5 = vld [vmem:[%s3649_s2] sm:$0xff]  ;;  %v115_v6 = vrot.slane %v3469_v4, %v3461_v2  ;;  %v120_v7 = vrot.slane %v3469_v4, %v3464_v3  ;;  %v125_v12 = vrot.slane %v3469_v4, %v3479_v10  ;;  %v132_v13 = vrot.slane %v3469_v4, %v3482_v11  ;;  %v2887_v44 = vld [vmem:[#allocation2 + $0x38] ss:$12 sps:$4 sm:$0xff]   ;;  %v2894_v49 = vld [vmem:[#allocation2 + $0x60] ss:$12 sps:$4 sm:$0xff]  }
  0x53   :  { %v138_v17 = vrot.slane %v3469_v4, %v137_v14  ;;  %v155_v29 = vrot.slane %v3469_v4, %v154_v23  ;;  %v160_v32 = vrot.slane %v3469_v4, %v159_v27  ;;  %375 = vmatpush1.bf16.msra.mxu0 %v2882_v40  ;;  %2801 = vmatpush3.bf16.msra.mxu1 %v2883_v41  ;;  %v2888_v45 = vld [vmem:[#allocation2 + $0x4c] ss:$12 sps:$4 sm:$0xff]   ;;  %v2890_v46 = vld [vmem:[#allocation2 + $0x48] ss:$12 sps:$4 sm:$0xff]   ;;  %v2891_v47 = vld [vmem:[#allocation2 + $0x50] ss:$12 sps:$4 sm:$0xff]  }
  0x54   :  { %v116_v8 = vmul.f32 %v115_v6, %v111_v5  ;;  %376 = vmatprep.subr.bf16.mxu0 %v2884_v42  ;;  %2802 = vmatprep.subr.bf16.mxu1 %v3312_v36  ;;  %v2892_v48 = vld [vmem:[#allocation2 + $0x64] ss:$12 sps:$4 sm:$0xff]   ;;  %v2895_v50 = vld [vmem:[#allocation2 + $0x68] ss:$12 sps:$4 sm:$0xff]   ;;  %v2899_v53 = vld [vmem:[#allocation2 + $0x80] ss:$12 sps:$4 sm:$0xff]   ;;  %v167_v60 = vrot.slane %v3469_v4, %v166_v57 }
  0x55   :  { %v2896_v51 = vld [vmem:[#allocation2 + $0x7c] ss:$12 sps:$4 sm:$0xff]   ;;  %v2898_v52 = vld [vmem:[#allocation2 + $0x78] ss:$12 sps:$4 sm:$0xff]   ;;  %v2900_v54 = vld [vmem:[#allocation2 + $0x94] ss:$12 sps:$4 sm:$0xff]  }
  0x56   :  { %v121_v9 = vadd.f32 %v120_v7, %v116_v8  ;;  %v2902_v55 = vld [vmem:[#allocation2 + $0x90] ss:$12 sps:$4 sm:$0xff]   ;;  %v2903_v56 = vld [vmem:[#allocation2 + $0x98] ss:$12 sps:$4 sm:$0xff]   ;;  %v2906_v62 = vld [vmem:[#allocation2 + $0xa8] ss:$12 sps:$4 sm:$0xff]  }
  0x57   :  { %377 = vmatpush1.bf16.msra.mxu0 %v2886_v43  ;;  %2803 = vmatpush3.bf16.msra.mxu1 %v2887_v44  ;;  %v110_v58 = vld [vmem:[%s3632_s1 + $0x8] sm:$0x7]  ;;  %v2907_v63 = vld [vmem:[#allocation2 + $0xb0] ss:$12 sps:$4 sm:$0xff]   ;;  %v3315_v8 = vmov 0   ;;  %vm3316_vm0 = vmmov 0  }
  0x58   :  { %127 = vrot.lane.b32.xlu0 %v121_v9, %s3308_s21  ;;  %v126_v15 = vmul.f32 %v125_v12, %v121_v9  ;;  %378 = vmatprep.subr.bf16.mxu0 %v2888_v45  ;;  %v2904_v59 = vld [vmem:[#allocation2 + $0xac] ss:$12 sps:$4 sm:$0xff]   ;;  %v172_v61 = vrot.slane %v110_v58, %v3461_v2  ;;  %v180_v0 = vrot.slane %v110_v58, %v3464_v3  ;;  %v2910_v4 = vld [vmem:[#allocation4 + $0x4] ss:$16 sps:$4 sm:$0xff]   ;;  %s3317_s1 = smov 118  }
  0x59   :  { %2804 = vmatprep.subr.bf16.mxu1 %v3312_v36  ;;  %404 = vmatprep.mubr.bf16.mxu0 %v3315_v8  ;;  %v2913_v14 = vld [vmem:[#allocation4 + $0xc] ss:$16 sps:$4 sm:$0xff]   ;;  %v2917_v27 = vld [vmem:[#allocation4 + $0x28] ss:$16 sps:$4 sm:$0xff]   ;;  %v2926_v34 = vld [vmem:[#allocation4 + $0x60] ss:$16 sps:$4 sm:$0xff]  }
  0x5a   :  { %2814 = vmatprep.mubr.msk.bf16.mxu1 %vm3316_vm0, %v3312_v36  ;;  %v2931_v33 = vld [vmem:[#allocation4 + $0x6c] ss:$16 sps:$4 sm:$0xff]   ;;  %v2934_v37 = vld [vmem:[#allocation4 + $0x84] ss:$16 sps:$4 sm:$0xff]   ;;  %v2935_v40 = vld [vmem:[#allocation4 + $0x88] ss:$16 sps:$4 sm:$0xff]  }
  0x5b   :  { %379 = vmatpush1.bf16.msra.mxu0 %v2890_v46  ;;  %2805 = vmatpush3.bf16.msra.mxu1 %v2891_v47  ;;  %v2937_v38 = vld [vmem:[#allocation4 + $0x8c] ss:$16 sps:$4 sm:$0xff]   ;;  %v2940_v41 = vld [vmem:[#allocation4 + $0xa4] ss:$16 sps:$4 sm:$0xff]   ;;  %v2938_v43 = vld [vmem:[#allocation4 + $0xa0] ss:$16 sps:$4 sm:$0xff]  }
  0x5c   :  { %380 = vmatprep.subr.bf16.mxu0 %v2892_v48  ;;  %2806 = vmatprep.subr.bf16.mxu1 %v3312_v36  ;;  %v2943_v42 = vld [vmem:[#allocation4 + $0xac] ss:$16 sps:$4 sm:$0xff]   ;;  %v2941_v44 = vld [vmem:[#allocation4 + $0xa8] ss:$16 sps:$4 sm:$0xff]   ;;  %v2946_v45 = vld [vmem:[#allocation4 + $0xc4] ss:$16 sps:$4 sm:$0xff]  }
  0x5d   :  { %v2949_v46 = vld [vmem:[#allocation4 + $0xcc] ss:$16 sps:$4 sm:$0xff]   ;;  %v2944_v47 = vld [vmem:[#allocation4 + $0xc0] ss:$16 sps:$4 sm:$0xff]   ;;  %v2947_v48 = vld [vmem:[#allocation4 + $0xc8] ss:$16 sps:$4 sm:$0xff]  }
  0x5e   :  { %v2964_v57 = vld [vmem:[#allocation4 + $0x124] ss:$16 sps:$4 sm:$0xff]  }
  0x5f   :  { %381 = vmatpush1.bf16.msra.mxu0 %v2894_v49  ;;  %2807 = vmatpush3.bf16.msra.mxu1 %v2895_v50  ;;  %v2952_v49 = vld [vmem:[#allocation4 + $0xe4] ss:$16 sps:$4 sm:$0xff]   ;;  %v2955_v50 = vld [vmem:[#allocation4 + $0xec] ss:$16 sps:$4 sm:$0xff]  }
  0x60   :  { %382 = vmatprep.subr.bf16.mxu0 %v2896_v51  ;;  %2808 = vmatprep.subr.bf16.mxu1 %v3312_v36  ;;  %v2950_v51 = vld [vmem:[#allocation4 + $0xe0] ss:$16 sps:$4 sm:$0xff]  }
  0x63   :  { %383 = vmatpush1.bf16.msra.mxu0 %v2898_v52  ;;  %2809 = vmatpush3.bf16.msra.mxu1 %v2899_v53  ;;  %v2953_v52 = vld [vmem:[#allocation4 + $0xe8] ss:$16 sps:$4 sm:$0xff]   ;;  %v2958_v53 = vld [vmem:[#allocation4 + $0x104] ss:$16 sps:$4 sm:$0xff]  }
  0x64   :  { %384 = vmatprep.subr.bf16.mxu0 %v2900_v54  ;;  %2810 = vmatprep.subr.bf16.mxu1 %v3312_v36  ;;  %v2961_v54 = vld [vmem:[#allocation4 + $0x10c] ss:$16 sps:$4 sm:$0xff]  }
  0x67   :  { %385 = vmatpush1.bf16.msra.mxu0 %v2902_v55  ;;  %2811 = vmatpush3.bf16.msra.mxu1 %v2903_v56  ;;  %v2956_v55 = vld [vmem:[#allocation4 + $0x100] ss:$16 sps:$4 sm:$0xff]   ;;  %v2959_v56 = vld [vmem:[#allocation4 + $0x108] ss:$16 sps:$4 sm:$0xff]  }
  0x68   :  { %2812 = vmatprep.subr.bf16.mxu1 %v3312_v36  ;;  %386 = vmatprep.subr.bf16.mxu0 %v2904_v59  ;;  %v2962_v59 = vld [vmem:[#allocation4 + $0x120] ss:$16 sps:$4 sm:$0xff]  }
  0x6b   :  { %387 = vmatpush1.bf16.msra.mxu0 %v2906_v62  ;;  %2813 = vmatpush3.bf16.msra.mxu1 %v2907_v63  ;;  %v2973_v62 = vld [vmem:[#allocation4 + $0x14c] ss:$16 sps:$4 sm:$0xff]   ;;  %v2968_v63 = vld [vmem:[#allocation4 + $0x140] ss:$16 sps:$4 sm:$0xff]  }
  0x6c   :  { %1097 = vmatprep.subr.bf16.mxu0 %v2910_v4  ;;  %1179 = vmatprep.subr.bf16.mxu1 %v2913_v14  ;;  %v2982_v4 = vld [vmem:[#allocation4 + $0x184] ss:$16 sps:$4 sm:$0xff]  }
  0x6d   :  { %v2988_v14 = vld [vmem:[#allocation4 + $0x1a4] ss:$16 sps:$4 sm:$0xff]  }
  0xca   :  { %v128_v16 = vpop.permute.xlu0 %127 }
  0xcb   :  { %v133_v18 = vmul.f32 %v132_v13, %v128_v16  ;;  %v186_v13 = vrot.slane %v110_v58, %v3479_v10  ;;  %v2967_v58 = vld [vmem:[#allocation4 + $0x12c] ss:$16 sps:$4 sm:$0xff]  }
  0xcd   :  { %v134_v19 = vadd.f32 %v133_v18, %v126_v15 }
  0xcf   :  { %v139_v20 = vadd.f32 %v138_v17, %v134_v19 }
  0xd1   :  { %143 = vrot.lane.b32.xlu1 %v139_v20, %s3309_s0  ;;  %140 = vrot.lane.b32.xlu0 %v139_v20, %s3308_s21 }
  0xd5   :  { %145 = vrot.lane.b32.xlu1 %v139_v20, %s3310_s17  ;;  %149 = vrot.lane.b32.xlu0 %v139_v20, %s3311_s18 }
 0x143   :  { %v144_v21 = vpop.permute.xlu1 %143  ;;  %v141_v22 = vpop.permute.xlu0 %140 }
 0x144   :  { %v142_v25 = vmax.f32 %v139_v20, %v141_v22  ;;  %v2911_v22 = vld [vmem:[#allocation4 + $0x8] ss:$16 sps:$4 sm:$0xff]  }
 0x147   :  { %v146_v24 = vpop.permute.xlu1 %145  ;;  %v150_v30 = vpop.permute.xlu0 %149 }
 0x148   :  { %v147_v26 = vmax.f32 %v144_v21, %v146_v24  ;;  %v2908_v21 = vld [vmem:[#allocation4] ss:$16 sps:$4 sm:$0xff]   ;;  %v2916_v24 = vld [vmem:[#allocation4 + $0x24] ss:$16 sps:$4 sm:$0xff]  }
 0x14a   :  { %v148_v28 = vmax.f32 %v142_v25, %v147_v26  ;;  %v2919_v25 = vld [vmem:[#allocation4 + $0x2c] ss:$16 sps:$4 sm:$0xff]   ;;  %v2914_v26 = vld [vmem:[#allocation4 + $0x20] ss:$16 sps:$4 sm:$0xff]  }
 0x14c   :  { %v151_v31 = vmax.f32 %v148_v28, %v150_v30  ;;  %v2922_v28 = vld [vmem:[#allocation4 + $0x44] ss:$16 sps:$4 sm:$0xff]   ;;  %v2920_v30 = vld [vmem:[#allocation4 + $0x40] ss:$16 sps:$4 sm:$0xff]  }
 0x14e   :  { %v156_v35 = vmul.f32 %v155_v29, %v151_v31  ;;  %v2925_v29 = vld [vmem:[#allocation4 + $0x4c] ss:$16 sps:$4 sm:$0xff]   ;;  %v2923_v31 = vld [vmem:[#allocation4 + $0x48] ss:$16 sps:$4 sm:$0xff]  }
 0x150   :  { %v3495_v39 = vadd.f32 %v160_v32, %v156_v35  ;;  %v2928_v32 = vld [vmem:[#allocation4 + $0x64] ss:$16 sps:$4 sm:$0xff]   ;;  %v2929_v35 = vld [vmem:[#allocation4 + $0x68] ss:$16 sps:$4 sm:$0xff]  }
 0x152   :  { %175 = vrot.lane.b32.xlu0 %v3495_v39, %s3313_s20  ;;  %162 = vrot.lane.b32.xlu1 %v3495_v39, %s3314_s24  ;;  %v173_v1 = vmul.f32 %v172_v61, %v3495_v39  ;;  %v2932_v39 = vld [vmem:[#allocation4 + $0x80] ss:$16 sps:$4 sm:$0xff]   ;;  %v2970_v61 = vld [vmem:[#allocation4 + $0x144] ss:$16 sps:$4 sm:$0xff]  }
 0x1c4   :  { %v176_v5 = vpop.permute.xlu0 %175  ;;  %v163_v6 = vpop.permute.xlu1 %162 }
 0x1c5   :  { %v168_v7 = vmul.f32 %v167_v60, %v163_v6  ;;  %v181_v9 = vmul.f32 %v180_v0, %v176_v5  ;;  %v2965_v60 = vld [vmem:[#allocation4 + $0x128] ss:$16 sps:$4 sm:$0xff]   ;;  %v2976_v5 = vld [vmem:[#allocation4 + $0x164] ss:$16 sps:$4 sm:$0xff]   ;;  %v2979_v6 = vld [vmem:[#allocation4 + $0x16c] ss:$16 sps:$4 sm:$0xff]  }
 0x1c6   :  { %v2971_v0 = vld [vmem:[#allocation4 + $0x148] ss:$16 sps:$4 sm:$0xff]  }
 0x1c7   :  { %v174_v12 = vadd.f32 %v173_v1, %v168_v7  ;;  %v2974_v7 = vld [vmem:[#allocation4 + $0x160] ss:$16 sps:$4 sm:$0xff]   ;;  %v2977_v1 = vld [vmem:[#allocation4 + $0x168] ss:$16 sps:$4 sm:$0xff]  }
 0x1c9   :  { %v182_v15 = vadd.f32 %v181_v9, %v174_v12  ;;  %v2985_v9 = vld [vmem:[#allocation4 + $0x18c] ss:$16 sps:$4 sm:$0xff]   ;;  %v2980_v12 = vld [vmem:[#allocation4 + $0x180] ss:$16 sps:$4 sm:$0xff]  }
 0x1cb   :  { %v187_v16 = vadd.f32 %v186_v13, %v182_v15  ;;  %v2983_v13 = vld [vmem:[#allocation4 + $0x188] ss:$16 sps:$4 sm:$0xff]   ;;  %v2991_v15 = vld [vmem:[#allocation4 + $0x1ac] ss:$16 sps:$4 sm:$0xff]  }
 0x1cd   :  { %191 = vrot.lane.b32.xlu0 %v187_v16, %s3317_s1  ;;  %188 = vrot.lane.b32.xlu1 %v187_v16, %s3313_s20 }
 0x23f   :  { %v189_v17 = vpop.permute.xlu1 %188  ;;  %v192_v19 = vpop.permute.xlu0 %191 }
 0x240   :  { %v190_v18 = vmax.f32 %v187_v16, %v189_v17  ;;  %v2986_v16 = vld [vmem:[#allocation4 + $0x1a0] ss:$16 sps:$4 sm:$0xff]   ;;  %v2989_v17 = vld [vmem:[#allocation4 + $0x1a8] ss:$16 sps:$4 sm:$0xff]  }
 0x242   :  { %v193_v20 = vmax.f32 %v190_v18, %v192_v19  ;;  %v2994_v18 = vld [vmem:[#allocation4 + $0x1c4] ss:$16 sps:$4 sm:$0xff]   ;;  %v2997_v19 = vld [vmem:[#allocation4 + $0x1cc] ss:$16 sps:$4 sm:$0xff]  }
 0x244   :  { %v194_v23 = vpack.c.bf16 %v193_v20, %v193_v20  ;;  %v2992_v20 = vld [vmem:[#allocation4 + $0x1c0] ss:$16 sps:$4 sm:$0xff]  }
 0x246   :  { %405 = vmatmul.mubr.bf16.vlgmr.msra.gmra.mrb[0].mxu0 %v194_v23  ;;  %2815 = vmatmul.mubr.bf16.vlgmr.msra.gmra.mrb[0].mxu1 %v194_v23  ;;  %v3003_v23 = vld [vmem:[#allocation4 + $0x1ec] ss:$16 sps:$4 sm:$0xff]  }
 0x247   :  { %1098 = vmatpush1.bf16.msra.mxu0 %v2908_v21  ;;  %1180 = vmatpush1.bf16.msra.mxu1 %v2911_v22  ;;  %v2995_v21 = vld [vmem:[#allocation4 + $0x1c8] ss:$16 sps:$4 sm:$0xff]   ;;  %v3000_v22 = vld [vmem:[#allocation4 + $0x1e4] ss:$16 sps:$4 sm:$0xff]  }
 0x248   :  { %1099 = vmatprep.subr.bf16.mxu0 %v2916_v24  ;;  %1181 = vmatprep.subr.bf16.mxu1 %v2919_v25  ;;  %v2998_v24 = vld [vmem:[#allocation4 + $0x1e0] ss:$16 sps:$4 sm:$0xff]   ;;  %v3001_v25 = vld [vmem:[#allocation4 + $0x1e8] ss:$16 sps:$4 sm:$0xff]  }
 0x24b   :  { %1100 = vmatpush1.bf16.msra.mxu0 %v2914_v26  ;;  %1182 = vmatpush1.bf16.msra.mxu1 %v2917_v27  ;;  %v3006_v26 = vld [vmem:[#allocation4 + $0x204] ss:$16 sps:$4 sm:$0xff]   ;;  %v3009_v27 = vld [vmem:[#allocation4 + $0x20c] ss:$16 sps:$4 sm:$0xff]  }
 0x24c   :  { %1101 = vmatprep.subr.bf16.mxu0 %v2922_v28  ;;  %1183 = vmatprep.subr.bf16.mxu1 %v2925_v29  ;;  %v3523_v28 = vld [vmem:[%s3634_s3] sm:$0x7] }
 0x24d   :  { %v232_v29 = vrot.slane %v3523_v28, %v3461_v2 }
 0x24f   :  { %1102 = vmatpush1.bf16.msra.mxu0 %v2920_v30  ;;  %1184 = vmatpush1.bf16.msra.mxu1 %v2923_v31  ;;  %v3530_v30 = vld [vmem:[%s3635_s4] sm:$0x7]  ;;  %v236_v31 = vrot.slane %v3523_v28, %v3464_v3 }
 0x250   :  { %1103 = vmatprep.subr.bf16.mxu0 %v2928_v32  ;;  %1185 = vmatprep.subr.bf16.mxu1 %v2931_v33  ;;  %v3537_v33 = vld [vmem:[%s3636_s5] sm:$0x7] }
 0x253   :  { %1104 = vmatpush1.bf16.msra.mxu0 %v2926_v34  ;;  %1186 = vmatpush1.bf16.msra.mxu1 %v2929_v35 }
 0x254   :  { %1105 = vmatprep.subr.bf16.mxu0 %v2934_v37  ;;  %1187 = vmatprep.subr.bf16.mxu1 %v2937_v38  ;;  %v461_v37 = vrot.slane %v3530_v30, %v3461_v2 }
 0x257   :  { %1106 = vmatpush1.bf16.msra.mxu0 %v2932_v39  ;;  %1188 = vmatpush1.bf16.msra.mxu1 %v2935_v40 }
 0x258   :  { %1107 = vmatprep.subr.bf16.mxu0 %v2940_v41  ;;  %1189 = vmatprep.subr.bf16.mxu1 %v2943_v42  ;;  %v465_v41 = vrot.slane %v3530_v30, %v3464_v3 }
 0x25b   :  { %1108 = vmatpush1.bf16.msra.mxu0 %v2938_v43  ;;  %1190 = vmatpush1.bf16.msra.mxu1 %v2941_v44 }
 0x25c   :  { %1109 = vmatprep.subr.bf16.mxu0 %v2946_v45  ;;  %1191 = vmatprep.subr.bf16.mxu1 %v2949_v46  ;;  %v481_v45 = vrot.slane %v3537_v33, %v3461_v2 }
 0x25f   :  { %1110 = vmatpush1.bf16.msra.mxu0 %v2944_v47  ;;  %1192 = vmatpush1.bf16.msra.mxu1 %v2947_v48 }
 0x260   :  { %1111 = vmatprep.subr.bf16.mxu0 %v2952_v49  ;;  %1193 = vmatprep.subr.bf16.mxu1 %v2955_v50  ;;  %v485_v49 = vrot.slane %v3537_v33, %v3464_v3 }
 0x263   :  { %1112 = vmatpush1.bf16.msra.mxu0 %v2950_v51  ;;  %1194 = vmatpush1.bf16.msra.mxu1 %v2953_v52 }
 0x264   :  { %1113 = vmatprep.subr.bf16.mxu0 %v2958_v53  ;;  %1195 = vmatprep.subr.bf16.mxu1 %v2961_v54 }
 0x267   :  { %1114 = vmatpush1.bf16.msra.mxu0 %v2956_v55  ;;  %1196 = vmatpush1.bf16.msra.mxu1 %v2959_v56  ;;  %v3004_v55 = vld [vmem:[#allocation4 + $0x200] ss:$16 sps:$4 sm:$0xff]   ;;  %v3007_v56 = vld [vmem:[#allocation4 + $0x208] ss:$16 sps:$4 sm:$0xff]  }
 0x268   :  { %1115 = vmatprep.subr.bf16.mxu0 %v2964_v57  ;;  %1197 = vmatprep.subr.bf16.mxu1 %v2967_v58  ;;  %v3012_v58 = vld [vmem:[#allocation4 + $0x224] ss:$16 sps:$4 sm:$0xff]  }
 0x26b   :  { %1116 = vmatpush1.bf16.msra.mxu0 %v2962_v59  ;;  %1198 = vmatpush1.bf16.msra.mxu1 %v2965_v60  ;;  %v3015_v59 = vld [vmem:[#allocation4 + $0x22c] ss:$16 sps:$4 sm:$0xff]   ;;  %v3010_v60 = vld [vmem:[#allocation4 + $0x220] ss:$16 sps:$4 sm:$0xff]  }
 0x26c   :  { %1117 = vmatprep.subr.bf16.mxu0 %v2970_v61  ;;  %1199 = vmatprep.subr.bf16.mxu1 %v2973_v62  ;;  %v3013_v61 = vld [vmem:[#allocation4 + $0x228] ss:$16 sps:$4 sm:$0xff]   ;;  %v3018_v62 = vld [vmem:[#allocation4 + $0x244] ss:$16 sps:$4 sm:$0xff]  }
 0x26f   :  { %1118 = vmatpush1.bf16.msra.mxu0 %v2968_v63  ;;  %1200 = vmatpush1.bf16.msra.mxu1 %v2971_v0  ;;  %v3021_v63 = vld [vmem:[#allocation4 + $0x24c] ss:$16 sps:$4 sm:$0xff]   ;;  %v3016_v0 = vld [vmem:[#allocation4 + $0x240] ss:$16 sps:$4 sm:$0xff]  }
 0x270   :  { %1119 = vmatprep.subr.bf16.mxu0 %v2976_v5  ;;  %1201 = vmatprep.subr.bf16.mxu1 %v2979_v6  ;;  %v3019_v5 = vld [vmem:[#allocation4 + $0x248] ss:$16 sps:$4 sm:$0xff]   ;;  %v3024_v6 = vld [vmem:[#allocation4 + $0x264] ss:$16 sps:$4 sm:$0xff]  }
 0x273   :  { %1120 = vmatpush1.bf16.msra.mxu0 %v2974_v7  ;;  %1202 = vmatpush1.bf16.msra.mxu1 %v2977_v1  ;;  %v3027_v7 = vld [vmem:[#allocation4 + $0x26c] ss:$16 sps:$4 sm:$0xff]   ;;  %v3022_v1 = vld [vmem:[#allocation4 + $0x260] ss:$16 sps:$4 sm:$0xff]  }
 0x274   :  { %1121 = vmatprep.subr.bf16.mxu0 %v2982_v4  ;;  %1203 = vmatprep.subr.bf16.mxu1 %v2985_v9  ;;  %v3025_v4 = vld [vmem:[#allocation4 + $0x268] ss:$16 sps:$4 sm:$0xff]   ;;  %v240_v9 = vrot.slane %v3523_v28, %v3479_v10  ;;  %v3048_v28 = vld [vmem:[#allocation4 + $0x2e4] ss:$16 sps:$4 sm:$0xff]  }
 0x277   :  { %1122 = vmatpush1.bf16.msra.mxu0 %v2980_v12  ;;  %1204 = vmatpush1.bf16.msra.mxu1 %v2983_v13  ;;  %v3030_v12 = vld [vmem:[#allocation4 + $0x284] ss:$16 sps:$4 sm:$0xff]   ;;  %v3033_v13 = vld [vmem:[#allocation4 + $0x28c] ss:$16 sps:$4 sm:$0xff]  }
 0x278   :  { %1123 = vmatprep.subr.bf16.mxu0 %v2988_v14  ;;  %1205 = vmatprep.subr.bf16.mxu1 %v2991_v15  ;;  %v3031_v14 = vld [vmem:[#allocation4 + $0x288] ss:$16 sps:$4 sm:$0xff]  }
 0x27b   :  { %1124 = vmatpush1.bf16.msra.mxu0 %v2986_v16  ;;  %1206 = vmatpush1.bf16.msra.mxu1 %v2989_v17  ;;  %v3036_v16 = vld [vmem:[#allocation4 + $0x2a4] ss:$16 sps:$4 sm:$0xff]   ;;  %v3039_v17 = vld [vmem:[#allocation4 + $0x2ac] ss:$16 sps:$4 sm:$0xff]  }
 0x27c   :  { %1125 = vmatprep.subr.bf16.mxu0 %v2994_v18  ;;  %1207 = vmatprep.subr.bf16.mxu1 %v2997_v19  ;;  %v3034_v18 = vld [vmem:[#allocation4 + $0x2a0] ss:$16 sps:$4 sm:$0xff]   ;;  %v3037_v19 = vld [vmem:[#allocation4 + $0x2a8] ss:$16 sps:$4 sm:$0xff]  }
 0x27f   :  { %1126 = vmatpush1.bf16.msra.mxu0 %v2992_v20  ;;  %1208 = vmatpush1.bf16.msra.mxu1 %v2995_v21  ;;  %v469_v21 = vrot.slane %v3530_v30, %v3479_v10  ;;  %v3049_v30 = vld [vmem:[#allocation4 + $0x2e8] ss:$16 sps:$4 sm:$0xff]  }
 0x280   :  { %1127 = vmatprep.subr.bf16.mxu0 %v3000_v22  ;;  %1209 = vmatprep.subr.bf16.mxu1 %v3003_v23  ;;  %v3042_v22 = vld [vmem:[#allocation4 + $0x2c4] ss:$16 sps:$4 sm:$0xff]   ;;  %v3045_v23 = vld [vmem:[#allocation4 + $0x2cc] ss:$16 sps:$4 sm:$0xff]  }
 0x283   :  { %1128 = vmatpush1.bf16.msra.mxu0 %v2998_v24  ;;  %1210 = vmatpush1.bf16.msra.mxu1 %v3001_v25  ;;  %v3040_v24 = vld [vmem:[#allocation4 + $0x2c0] ss:$16 sps:$4 sm:$0xff]   ;;  %v3043_v25 = vld [vmem:[#allocation4 + $0x2c8] ss:$16 sps:$4 sm:$0xff]  }
 0x284   :  { %1138 = vmatprep.subr.bf16.mxu0 %v3006_v26  ;;  %1220 = vmatprep.subr.bf16.mxu1 %v3009_v27  ;;  %v489_v27 = vrot.slane %v3537_v33, %v3479_v10  ;;  %v3057_v33 = vld [vmem:[#allocation6 + $0x1c] ss:$12 sps:$4 sm:$0xff]  }
 0x319   :  { %v406_v32 = vpop.f32.mrb[0].mxu0  ;;  %v447_v34 = vpop.f32.mrb[0].mxu1 }
 0x31a   :  { %v407_v35 = vadd.f32 %v406_v32, %v232_v29  ;;  %v408_v38 = vpop.f32.mrb[1].mxu0  ;;  %v2816_v39 = vpop.f32.mrb[1].mxu1  ;;  %v448_v15 = vadd.f32 %v447_v34, %v240_v9  ;;  %v3051_v29 = vld [vmem:[#allocation4 + $0x2ec] ss:$16 sps:$4 sm:$0xff]   ;;  %v3054_v34 = vld [vmem:[#allocation6 + $0x4] ss:$12 sps:$4 sm:$0xff]  }
 0x31b   :  { %v409_v40 = vadd.f32 %v408_v38, %v236_v31  ;;  %v410_v42 = vpop.f32.mrb[2].mxu0  ;;  %v450_v43 = vpop.f32.mrb[2].mxu1  ;;  %v3046_v31 = vld [vmem:[#allocation4 + $0x2e0] ss:$16 sps:$4 sm:$0xff]   ;;  %v3080_v38 = vld [vmem:[#allocation6 + $0x8] ss:$12 sps:$4 sm:$0xff]  }
 0x31c   :  { %v453_v44 = vmax.f32 %v407_v35, 0.0  ;;  %v411_v46 = vpop.f32.mrb[3].mxu0  ;;  %v2817_v47 = vpop.f32.mrb[3].mxu1  ;;  %v455_v20 = vmax.f32 %v448_v15, 0.0  ;;  %v3079_v35 = vld [vmem:[#allocation6 + $0xc8] ss:$12 sps:$4 sm:$0xff]  }
 0x31d   :  { %v454_v48 = vmax.f32 %v409_v40, 0.0  ;;  %v3084_v40 = vld [vmem:[#allocation6 + $0xe0] ss:$12 sps:$4 sm:$0xff]   ;;  %v3090_v46 = vld [vmem:[#allocation6 + $0x38] ss:$12 sps:$4 sm:$0xff]  }
 0x31e   :  { %v473_v50 = vmul.f32 %v461_v37, %v453_v44  ;;  %v475_v26 = vmul.f32 %v469_v21, %v455_v20  ;;  %v3052_v37 = vld [vmem:[#allocation6] ss:$12 sps:$4 sm:$0xff]   ;;  %v3089_v44 = vld [vmem:[#allocation6 + $0xf8] ss:$12 sps:$4 sm:$0xff]   ;;  %v3114_v20 = vld [vmem:[#allocation6 + $0x170] ss:$12 sps:$4 sm:$0xff]  }
 0x31f   :  { %v474_v51 = vmul.f32 %v465_v41, %v454_v48  ;;  %v3055_v41 = vld [vmem:[#allocation6 + $0x18] ss:$12 sps:$4 sm:$0xff]   ;;  %v3085_v42 = vld [vmem:[#allocation6 + $0x20] ss:$12 sps:$4 sm:$0xff]   ;;  %v3094_v48 = vld [vmem:[#allocation6 + $0x110] ss:$12 sps:$4 sm:$0xff]  }
 0x320   :  { %v493_v52 = vadd.f32 %v481_v45, %v473_v50  ;;  %v495_v32 = vadd.f32 %v489_v27, %v475_v26  ;;  %v3060_v43 = vld [vmem:[#allocation6 + $0x34] ss:$12 sps:$4 sm:$0xff]   ;;  %v3058_v45 = vld [vmem:[#allocation6 + $0x30] ss:$12 sps:$4 sm:$0xff]   ;;  %v3063_v47 = vld [vmem:[#allocation6 + $0x4c] ss:$12 sps:$4 sm:$0xff]  }
 0x321   :  { %v494_v53 = vadd.f32 %v485_v49, %v474_v51  ;;  %v3061_v49 = vld [vmem:[#allocation6 + $0x48] ss:$12 sps:$4 sm:$0xff]   ;;  %v3095_v50 = vld [vmem:[#allocation6 + $0x50] ss:$12 sps:$4 sm:$0xff]   ;;  %v3096_v9 = vld [vmem:[#allocation6 + $0x120] ss:$12 sps:$4 sm:$0xff]  }
 0x322   :  { %v496_v57 = vpack.c.bf16 %v493_v52, %v493_v52  ;;  %v498_v39 = vpack.c.bf16 %v495_v32, %v495_v32  ;;  %v3066_v51 = vld [vmem:[#allocation6 + $0x64] ss:$12 sps:$4 sm:$0xff]   ;;  %v3099_v52 = vld [vmem:[#allocation6 + $0x128] ss:$12 sps:$4 sm:$0xff]  }
 0x323   :  { %v497_v54 = vpack.c.bf16 %v494_v53, %v494_v53  ;;  %v3064_v53 = vld [vmem:[#allocation6 + $0x60] ss:$12 sps:$4 sm:$0xff]   ;;  %v3111_v21 = vld [vmem:[#allocation6 + $0x168] ss:$12 sps:$4 sm:$0xff]   ;;  %v3565_v27 = vld [vmem:[%s3639_s8] sm:$0xf] }
 0x324   :  { %v3108_v15 = vld [vmem:[#allocation6 + $0x154] ss:$12 sps:$4 sm:$0xff]  }
 0x325   :  { %1129 = vmatprep.mubr.bf16.mxu0 %v497_v54  ;;  %1211 = vmatprep.mubr.bf16.mxu1 %v497_v54  ;;  %v3100_v54 = vld [vmem:[#allocation6 + $0x68] ss:$12 sps:$4 sm:$0xff]  }
 0x326   :  { %1130 = vmatmul.mubr.bf16.vlgmr.msra.gmra.mrb[4].mxu0 %v496_v57  ;;  %1212 = vmatmul.mubr.bf16.vlgmr.msra.gmra.mrb[4].mxu1 %v496_v57  ;;  %v3072_v57 = vld [vmem:[#allocation6 + $0x94] ss:$12 sps:$4 sm:$0xff]  }
 0x327   :  { %1139 = vmatpush1.bf16.msra.mxu0 %v3004_v55  ;;  %1221 = vmatpush1.bf16.msra.mxu1 %v3007_v56  ;;  %v3069_v55 = vld [vmem:[#allocation6 + $0x7c] ss:$12 sps:$4 sm:$0xff]   ;;  %v3067_v56 = vld [vmem:[#allocation6 + $0x78] ss:$12 sps:$4 sm:$0xff]  }
 0x328   :  { %1140 = vmatprep.subr.bf16.mxu0 %v3012_v58  ;;  %1222 = vmatprep.subr.bf16.mxu1 %v3015_v59  ;;  %v3070_v58 = vld [vmem:[#allocation6 + $0x90] ss:$12 sps:$4 sm:$0xff]   ;;  %v3075_v59 = vld [vmem:[#allocation6 + $0xac] ss:$12 sps:$4 sm:$0xff]  }
 0x329   :  { %1170 = vmatprep.mubr.bf16.mxu0 %v3315_v8  ;;  %1252 = vmatprep.mubr.bf16.mxu1 %v3315_v8  ;;  %v3028_v8 = vld [vmem:[#allocation4 + $0x280] ss:$16 sps:$4 sm:$0xff]  }
 0x32b   :  { %1141 = vmatpush1.bf16.msra.mxu0 %v3010_v60  ;;  %1223 = vmatpush1.bf16.msra.mxu1 %v3013_v61  ;;  %v3073_v60 = vld [vmem:[#allocation6 + $0xa8] ss:$12 sps:$4 sm:$0xff]   ;;  %v3078_v61 = vld [vmem:[#allocation6 + $0xc4] ss:$12 sps:$4 sm:$0xff]  }
 0x32c   :  { %1142 = vmatprep.subr.bf16.mxu0 %v3018_v62  ;;  %1224 = vmatprep.subr.bf16.mxu1 %v3021_v63  ;;  %v3076_v62 = vld [vmem:[#allocation6 + $0xc0] ss:$12 sps:$4 sm:$0xff]   ;;  %v3083_v63 = vld [vmem:[#allocation6 + $0xdc] ss:$12 sps:$4 sm:$0xff]  }
 0x32f   :  { %1143 = vmatpush1.bf16.msra.mxu0 %v3016_v0  ;;  %1225 = vmatpush1.bf16.msra.mxu1 %v3019_v5  ;;  %v3081_v0 = vld [vmem:[#allocation6 + $0xd8] ss:$12 sps:$4 sm:$0xff]   ;;  %v3088_v5 = vld [vmem:[#allocation6 + $0xf4] ss:$12 sps:$4 sm:$0xff]  }
 0x330   :  { %1144 = vmatprep.subr.bf16.mxu0 %v3024_v6  ;;  %1226 = vmatprep.subr.bf16.mxu1 %v3027_v7  ;;  %v3086_v6 = vld [vmem:[#allocation6 + $0xf0] ss:$12 sps:$4 sm:$0xff]   ;;  %v3093_v7 = vld [vmem:[#allocation6 + $0x10c] ss:$12 sps:$4 sm:$0xff]  }
 0x333   :  { %1145 = vmatpush1.bf16.msra.mxu0 %v3022_v1  ;;  %1227 = vmatpush1.bf16.msra.mxu1 %v3025_v4  ;;  %v3091_v1 = vld [vmem:[#allocation6 + $0x108] ss:$12 sps:$4 sm:$0xff]   ;;  %v3098_v4 = vld [vmem:[#allocation6 + $0x124] ss:$12 sps:$4 sm:$0xff]  }
 0x334   :  { %1146 = vmatprep.subr.bf16.mxu0 %v3030_v12  ;;  %1228 = vmatprep.subr.bf16.mxu1 %v3033_v13  ;;  %v3103_v12 = vld [vmem:[#allocation6 + $0x13c] ss:$12 sps:$4 sm:$0xff]   ;;  %v3104_v13 = vld [vmem:[#allocation6 + $0x140] ss:$12 sps:$4 sm:$0xff]  }
 0x337   :  { %1147 = vmatpush1.bf16.msra.mxu0 %v3028_v8  ;;  %1229 = vmatpush1.bf16.msra.mxu1 %v3031_v14  ;;  %v3101_v8 = vld [vmem:[#allocation6 + $0x138] ss:$12 sps:$4 sm:$0xff]   ;;  %v3105_v14 = vld [vmem:[#allocation6 + $0x80] ss:$12 sps:$4 sm:$0xff]  }
 0x338   :  { %1148 = vmatprep.subr.bf16.mxu0 %v3036_v16  ;;  %1230 = vmatprep.subr.bf16.mxu1 %v3039_v17  ;;  %v3109_v16 = vld [vmem:[#allocation6 + $0x158] ss:$12 sps:$4 sm:$0xff]   ;;  %v3106_v17 = vld [vmem:[#allocation6 + $0x150] ss:$12 sps:$4 sm:$0xff]  }
 0x33b   :  { %1149 = vmatpush1.bf16.msra.mxu0 %v3034_v18  ;;  %1231 = vmatpush1.bf16.msra.mxu1 %v3037_v19  ;;  %v3110_v18 = vld [vmem:[#allocation6 + $0x98] ss:$12 sps:$4 sm:$0xff]  }
 0x33c   :  { %1150 = vmatprep.subr.bf16.mxu0 %v3042_v22  ;;  %1232 = vmatprep.subr.bf16.mxu1 %v3045_v23  ;;  %v3113_v19 = vld [vmem:[#allocation6 + $0x16c] ss:$12 sps:$4 sm:$0xff]   ;;  %v3115_v22 = vld [vmem:[#allocation6 + $0xb0] ss:$12 sps:$4 sm:$0xff]  }
 0x33d   :  { %v3118_v23 = vld [vmem:[#allocation6 + $0x184] ss:$12 sps:$4 sm:$0xff]  }
 0x33f   :  { %1151 = vmatpush1.bf16.msra.mxu0 %v3040_v24  ;;  %1233 = vmatpush1.bf16.msra.mxu1 %v3043_v25  ;;  %v3119_v24 = vld [vmem:[#allocation6 + $0x248] ss:$12 sps:$4 sm:$0xff]   ;;  %v3558_v25 = vld [vmem:[%s3638_s7] sm:$0xf] }
 0x340   :  { %1152 = vmatprep.subr.bf16.mxu0 %v3048_v28  ;;  %1234 = vmatprep.subr.bf16.mxu1 %v3051_v29  ;;  %v600_v26 = vrot.slane %v3558_v25, %v3461_v2  ;;  %v604_v28 = vrot.slane %v3558_v25, %v3464_v3  ;;  %v612_v29 = vrot.slane %v3558_v25, %v3482_v11 }
 0x343   :  { %1153 = vmatpush1.bf16.msra.mxu0 %v3046_v31  ;;  %1235 = vmatpush1.bf16.msra.mxu1 %v3049_v30  ;;  %v3574_v30 = vld [vmem:[%s3640_s9] sm:$0xf] }
 0x344   :  { %1978 = vmatprep.subr.bf16.mxu0 %v3054_v34  ;;  %2723 = vmatprep.subr.bf16.mxu1 %v3079_v35  ;;  %v1270_v35 = vrot.slane %v3565_v27, %v3461_v2 }
 0x346   :  { %1171 = vmatmul.mubr.bf16.vlgmr.msra.gmra.mrb[4].mxu0 %v498_v39  ;;  %1253 = vmatmul.mubr.bf16.vlgmr.msra.gmra.mrb[4].mxu1 %v498_v39 }
 0x347   :  { %1979 = vmatpush1.bf16.msra.mxu0 %v3052_v37  ;;  %2724 = vmatpush3.bf16.msra.mxu1 %v3080_v38 }
 0x348   :  { %1980 = vmatprep.subr.bf16.mxu0 %v3057_v33  ;;  %2725 = vmatprep.subr.bf16.mxu1 %v3084_v40  ;;  %v1274_v33 = vrot.slane %v3565_v27, %v3464_v3 }
 0x34b   :  { %1981 = vmatpush1.bf16.msra.mxu0 %v3055_v41  ;;  %2726 = vmatpush3.bf16.msra.mxu1 %v3085_v42  ;;  %v1282_v41 = vrot.slane %v3565_v27, %v3482_v11 }
 0x34c   :  { %1982 = vmatprep.subr.bf16.mxu0 %v3060_v43  ;;  %2727 = vmatprep.subr.bf16.mxu1 %v3089_v44 }
 0x34f   :  { %1983 = vmatpush1.bf16.msra.mxu0 %v3058_v45  ;;  %2728 = vmatpush3.bf16.msra.mxu1 %v3090_v46  ;;  %v1296_v45 = vrot.slane %v3574_v30, %v3461_v2 }
 0x350   :  { %1984 = vmatprep.subr.bf16.mxu0 %v3063_v47  ;;  %2729 = vmatprep.subr.bf16.mxu1 %v3094_v48 }
 0x353   :  { %1985 = vmatpush1.bf16.msra.mxu0 %v3061_v49  ;;  %2730 = vmatpush3.bf16.msra.mxu1 %v3095_v50  ;;  %v1300_v50 = vrot.slane %v3574_v30, %v3464_v3 }
 0x354   :  { %1986 = vmatprep.subr.bf16.mxu0 %v3066_v51  ;;  %2731 = vmatprep.subr.bf16.mxu1 %v3099_v52  ;;  %v1308_v52 = vrot.slane %v3574_v30, %v3482_v11  ;;  %v3125_v11 = vld [vmem:[#allocation6 + $0x1a0] ss:$12 sps:$4 sm:$0xff]  }
 0x357   :  { %1987 = vmatpush1.bf16.msra.mxu0 %v3064_v53  ;;  %2732 = vmatpush3.bf16.msra.mxu1 %v3100_v54 }
 0x358   :  { %1988 = vmatprep.subr.bf16.mxu0 %v3069_v55  ;;  %2733 = vmatprep.subr.bf16.mxu1 %v3104_v13  ;;  %v3131_v13 = vld [vmem:[#allocation6 + $0x1c8] ss:$12 sps:$4 sm:$0xff]  }
 0x35b   :  { %1989 = vmatpush1.bf16.msra.mxu0 %v3067_v56  ;;  %2734 = vmatpush3.bf16.msra.mxu1 %v3105_v14  ;;  %v608_v14 = vrot.slane %v3558_v25, %v3479_v10  ;;  %v1278_v25 = vrot.slane %v3565_v27, %v3479_v10  ;;  %v3155_v27 = vld [vmem:[#allocation6 + $0x230] ss:$12 sps:$4 sm:$0xff]  }
 0x35c   :  { %1990 = vmatprep.subr.bf16.mxu0 %v3072_v57  ;;  %2735 = vmatprep.subr.bf16.mxu1 %v3109_v16  ;;  %v3139_v16 = vld [vmem:[#allocation6 + $0x2a8] ss:$12 sps:$4 sm:$0xff]  }
 0x35f   :  { %1991 = vmatpush1.bf16.msra.mxu0 %v3070_v58  ;;  %2736 = vmatpush3.bf16.msra.mxu1 %v3110_v18  ;;  %v3140_v18 = vld [vmem:[#allocation6 + $0x1e8] ss:$12 sps:$4 sm:$0xff]  }
 0x360   :  { %1992 = vmatprep.subr.bf16.mxu0 %v3075_v59  ;;  %2737 = vmatprep.subr.bf16.mxu1 %v3114_v20  ;;  %v3116_v59 = vld [vmem:[#allocation6 + $0x180] ss:$12 sps:$4 sm:$0xff]   ;;  %v3143_v20 = vld [vmem:[#allocation6 + $0x1fc] ss:$12 sps:$4 sm:$0xff]  }
 0x363   :  { %1993 = vmatpush1.bf16.msra.mxu0 %v3073_v60  ;;  %2738 = vmatpush3.bf16.msra.mxu1 %v3115_v22  ;;  %v3120_v60 = vld [vmem:[#allocation6 + $0x188] ss:$12 sps:$4 sm:$0xff]   ;;  %v3141_v22 = vld [vmem:[#allocation6 + $0x1f8] ss:$12 sps:$4 sm:$0xff]  }
 0x364   :  { %1994 = vmatprep.subr.bf16.mxu0 %v3078_v61  ;;  %2745 = vmatprep.subr.bf16.mxu1 %v3119_v24 }
 0x367   :  { %1995 = vmatpush1.bf16.msra.mxu0 %v3076_v62  ;;  %v3123_v62 = vld [vmem:[#allocation6 + $0x19c] ss:$12 sps:$4 sm:$0xff]  }
 0x368   :  { %1996 = vmatprep.subr.bf16.mxu0 %v3083_v63  ;;  %v3124_v63 = vld [vmem:[#allocation6 + $0x260] ss:$12 sps:$4 sm:$0xff]  }
 0x36b   :  { %1997 = vmatpush1.bf16.msra.mxu0 %v3081_v0 }
 0x36c   :  { %1998 = vmatprep.subr.bf16.mxu0 %v3088_v5  ;;  %v3121_v5 = vld [vmem:[#allocation6 + $0x198] ss:$12 sps:$4 sm:$0xff]  }
 0x36f   :  { %1999 = vmatpush1.bf16.msra.mxu0 %v3086_v6  ;;  %v3128_v6 = vld [vmem:[#allocation6 + $0x1b4] ss:$12 sps:$4 sm:$0xff]  }
 0x370   :  { %2000 = vmatprep.subr.bf16.mxu0 %v3093_v7  ;;  %v3129_v7 = vld [vmem:[#allocation6 + $0x278] ss:$12 sps:$4 sm:$0xff]  }
 0x373   :  { %2001 = vmatpush1.bf16.msra.mxu0 %v3091_v1  ;;  %v3126_v1 = vld [vmem:[#allocation6 + $0x1b0] ss:$12 sps:$4 sm:$0xff]  }
 0x374   :  { %2002 = vmatprep.subr.bf16.mxu0 %v3098_v4  ;;  %v3130_v4 = vld [vmem:[#allocation6 + $0x1b8] ss:$12 sps:$4 sm:$0xff]  }
 0x377   :  { %2003 = vmatpush1.bf16.msra.mxu0 %v3096_v9  ;;  %v3133_v9 = vld [vmem:[#allocation6 + $0x1cc] ss:$12 sps:$4 sm:$0xff]  }
 0x378   :  { %2004 = vmatprep.subr.bf16.mxu0 %v3103_v12  ;;  %v3134_v12 = vld [vmem:[#allocation6 + $0x290] ss:$12 sps:$4 sm:$0xff]  }
 0x37b   :  { %2005 = vmatpush1.bf16.msra.mxu0 %v3101_v8  ;;  %v3135_v8 = vld [vmem:[#allocation6 + $0x1d0] ss:$12 sps:$4 sm:$0xff]  }
 0x37c   :  { %2006 = vmatprep.subr.bf16.mxu0 %v3108_v15  ;;  %v3138_v15 = vld [vmem:[#allocation6 + $0x1e4] ss:$12 sps:$4 sm:$0xff]  }
 0x37f   :  { %2007 = vmatpush1.bf16.msra.mxu0 %v3106_v17  ;;  %v3136_v17 = vld [vmem:[#allocation6 + $0x1e0] ss:$12 sps:$4 sm:$0xff]  }
 0x380   :  { %2008 = vmatprep.subr.bf16.mxu0 %v3113_v19 }
 0x383   :  { %2009 = vmatpush1.bf16.msra.mxu0 %v3111_v21  ;;  %v3144_v21 = vld [vmem:[#allocation6 + $0x2c0] ss:$12 sps:$4 sm:$0xff]  }
 0x384   :  { %2019 = vmatprep.subr.bf16.mxu0 %v3118_v23  ;;  %v3145_v23 = vld [vmem:[#allocation6 + $0x200] ss:$12 sps:$4 sm:$0xff]  }
 0x419   :  { %v1172_v31 = vpop.f32.mrb[4].mxu0  ;;  %v3576_v32 = vpop.f32.mrb[4].mxu1 }
 0x41a   :  { %v2838_v34 = vadd.f32 %v1172_v31, %v600_v26  ;;  %v1174_v37 = vpop.f32.mrb[5].mxu0  ;;  %v1256_v38 = vpop.f32.mrb[5].mxu1  ;;  %v2840_v19 = vadd.f32 %v3576_v32, %v608_v14  ;;  %v3148_v26 = vld [vmem:[#allocation6 + $0x214] ss:$12 sps:$4 sm:$0xff]   ;;  %v3150_v31 = vld [vmem:[#allocation6 + $0x218] ss:$12 sps:$4 sm:$0xff]  }
 0x41b   :  { %v2839_v39 = vadd.f32 %v1174_v37, %v604_v28  ;;  %v2841_v40 = vadd.f32 %v1256_v38, %v612_v29  ;;  %v1176_v42 = vpop.f32.mrb[6].mxu0  ;;  %v1258_v43 = vpop.f32.mrb[6].mxu1  ;;  %v3149_v28 = vld [vmem:[#allocation6 + $0x2d8] ss:$12 sps:$4 sm:$0xff]   ;;  %v3146_v29 = vld [vmem:[#allocation6 + $0x210] ss:$12 sps:$4 sm:$0xff]  }
 0x41c   :  { %v1261_v44 = vmax.f32 %v2838_v34, 0.0  ;;  %v1177_v46 = vpop.f32.mrb[7].mxu0  ;;  %v1259_v47 = vpop.f32.mrb[7].mxu1  ;;  %v1263_v24 = vmax.f32 %v2840_v19, 0.0  ;;  %v1304_v34 = vrot.slane %v3574_v30, %v3479_v10  ;;  %v3154_v37 = vld [vmem:[#allocation6 + $0x2f0] ss:$12 sps:$4 sm:$0xff]  }
 0x41d   :  { %v1262_v48 = vmax.f32 %v2839_v39, 0.0  ;;  %v1264_v49 = vmax.f32 %v2841_v40, 0.0  ;;  %v3151_v38 = vld [vmem:[#allocation6 + $0x228] ss:$12 sps:$4 sm:$0xff]   ;;  %v3156_v40 = vld [vmem:[#allocation6 + $0x240] ss:$12 sps:$4 sm:$0xff]  }
 0x41e   :  { %v1287_v51 = vmul.f32 %v1270_v35, %v1261_v44  ;;  %v1289_v32 = vmul.f32 %v1278_v25, %v1263_v24  ;;  %v3153_v35 = vld [vmem:[#allocation6 + $0x22c] ss:$12 sps:$4 sm:$0xff]   ;;  %v3161_v42 = vld [vmem:[#allocation6 + $0x25c] ss:$12 sps:$4 sm:$0xff]   ;;  %v3164_v43 = vld [vmem:[#allocation6 + $0x274] ss:$12 sps:$4 sm:$0xff]  }
 0x41f   :  { %v1288_v53 = vmul.f32 %v1274_v33, %v1262_v48  ;;  %v1290_v54 = vmul.f32 %v1282_v41, %v1264_v49  ;;  %v3158_v33 = vld [vmem:[#allocation6 + $0x244] ss:$12 sps:$4 sm:$0xff]   ;;  %v3165_v46 = vld [vmem:[#allocation6 + $0x288] ss:$12 sps:$4 sm:$0xff]   ;;  %v3168_v48 = vld [vmem:[#allocation6 + $0x2a0] ss:$12 sps:$4 sm:$0xff]  }
 0x420   :  { %v1313_v55 = vadd.f32 %v1296_v45, %v1287_v51  ;;  %v1315_v39 = vadd.f32 %v1304_v34, %v1289_v32  ;;  %v3159_v30 = vld [vmem:[#allocation6 + $0x258] ss:$12 sps:$4 sm:$0xff]   ;;  %v3162_v44 = vld [vmem:[#allocation6 + $0x270] ss:$12 sps:$4 sm:$0xff]   ;;  %v3176_v51 = vld [vmem:[#allocation6 + $0x2d4] ss:$12 sps:$4 sm:$0xff]  }
 0x421   :  { %v1314_v56 = vadd.f32 %v1300_v50, %v1288_v53  ;;  %v1316_v57 = vadd.f32 %v1308_v52, %v1290_v54  ;;  %v3167_v45 = vld [vmem:[#allocation6 + $0x28c] ss:$12 sps:$4 sm:$0xff]   ;;  %v3170_v47 = vld [vmem:[#allocation6 + $0x2a4] ss:$12 sps:$4 sm:$0xff]   ;;  %v3173_v49 = vld [vmem:[#allocation6 + $0x2bc] ss:$12 sps:$4 sm:$0xff]  }
 0x422   :  { %v1317_v61 = vpack.c.bf16 %v1313_v55, %v1313_v55  ;;  %v1319_v41 = vpack.c.bf16 %v1315_v39, %v1315_v39  ;;  %v3171_v50 = vld [vmem:[#allocation6 + $0x2b8] ss:$12 sps:$4 sm:$0xff]   ;;  %v3174_v52 = vld [vmem:[#allocation6 + $0x2d0] ss:$12 sps:$4 sm:$0xff]   ;;  %v3177_v54 = vld [vmem:[#allocation6 + $0x2e8] ss:$12 sps:$4 sm:$0xff]  }
 0x423   :  { %v1318_v58 = vpack.c.bf16 %v1314_v56, %v1314_v56  ;;  %v1320_v0 = vpack.c.bf16 %v1316_v57, %v1316_v57  ;;  %v3179_v53 = vld [vmem:[#allocation6 + $0x2ec] ss:$12 sps:$4 sm:$0xff]   ;;  %v3180_v55 = vld [vmem:[#allocation7 + $0x40] sm:$0xff]   ;;  %v2163_v34 = vld [vmem:[%s3644_s13] sm:$0x7] }
 0x424   :  { %v3181_v56 = vld [vmem:[#allocation7] sm:$0xff]   ;;  %v3182_v57 = vld [vmem:[#allocation7 + $0x48] sm:$0xff]   ;;  %v2168_v39 = vrot.slane %v2163_v34, %v3461_v2 }
 0x425   :  { %2010 = vmatprep.mubr.bf16.mxu0 %v1318_v58  ;;  %2092 = vmatprep.mubr.bf16.mxu1 %v1318_v58  ;;  %v3183_v58 = vld [vmem:[#allocation7 + $0x8] sm:$0xff]  }
 0x426   :  { %2011 = vmatmul.mubr.bf16.vlgmr.msra.gmra.mrb[8].mxu0 %v1317_v61  ;;  %2093 = vmatmul.mubr.bf16.vlgmr.msra.gmra.mrb[8].mxu1 %v1317_v61  ;;  %v3186_v61 = vld [vmem:[#allocation7 + $0x58] sm:$0xff]  }
 0x427   :  { %2020 = vmatpush1.bf16.msra.mxu0 %v3116_v59  ;;  %2746 = vmatpush3.bf16.msra.mxu1 %v3120_v60  ;;  %v3184_v59 = vld [vmem:[#allocation7 + $0x50] sm:$0xff]  }
 0x428   :  { %2051 = vmatprep.mubr.bf16.mxu0 %v1320_v0  ;;  %2132 = vmatprep.mubr.bf16.mxu1 %v1320_v0  ;;  %v3185_v60 = vld [vmem:[#allocation7 + $0x10] sm:$0xff]   ;;  %v3189_v0 = vld [vmem:[#allocation7 + $0x20] sm:$0xff]  }
 0x429   :  { %2021 = vmatprep.subr.bf16.mxu0 %v3123_v62  ;;  %2747 = vmatprep.subr.bf16.mxu1 %v3124_v63  ;;  %v3187_v62 = vld [vmem:[#allocation7 + $0x18] sm:$0xff]   ;;  %v3188_v63 = vld [vmem:[#allocation7 + $0x60] sm:$0xff]  }
 0x42b   :  { %2022 = vmatpush1.bf16.msra.mxu0 %v3121_v5  ;;  %2748 = vmatpush3.bf16.msra.mxu1 %v3125_v11  ;;  %v3190_v5 = vld [vmem:[#allocation7 + $0x68] sm:$0xff]  }
 0x42c   :  { %2023 = vmatprep.subr.bf16.mxu0 %v3128_v6  ;;  %2749 = vmatprep.subr.bf16.mxu1 %v3129_v7  ;;  %v3191_v11 = vld [vmem:[#allocation7 + $0x28] sm:$0xff]   ;;  %v3192_v6 = vld [vmem:[#allocation7 + $0x70] sm:$0xff]  }
 0x42d   :  { %v3193_v7 = vld [vmem:[#allocation7 + $0x30] sm:$0xff]  }
 0x42f   :  { %2024 = vmatpush1.bf16.msra.mxu0 %v3126_v1  ;;  %2750 = vmatpush3.bf16.msra.mxu1 %v3130_v4  ;;  %v3194_v1 = vld [vmem:[#allocation7 + $0x78] sm:$0xff]  }
 0x430   :  { %2025 = vmatprep.subr.bf16.mxu0 %v3133_v9  ;;  %2751 = vmatprep.subr.bf16.mxu1 %v3134_v12  ;;  %v3195_v4 = vld [vmem:[#allocation7 + $0x38] sm:$0xff]  }
 0x433   :  { %2026 = vmatpush1.bf16.msra.mxu0 %v3131_v13  ;;  %2752 = vmatpush3.bf16.msra.mxu1 %v3135_v8 }
 0x434   :  { %2027 = vmatprep.subr.bf16.mxu0 %v3138_v15  ;;  %2753 = vmatprep.subr.bf16.mxu1 %v3139_v16  ;;  %v1449_v15 = vld [vmem:[%s3642_s11] sm:$0x7] }
 0x435   :  { %v1462_v16 = vrot.slane %v1449_v15, %v3479_v10  ;;  %v1454_v24 = vrot.slane %v1449_v15, %v3461_v2  ;;  %v1458_v25 = vrot.slane %v1449_v15, %v3464_v3 }
 0x437   :  { %2028 = vmatpush1.bf16.msra.mxu0 %v3136_v17  ;;  %2754 = vmatpush3.bf16.msra.mxu1 %v3140_v18 }
 0x438   :  { %2029 = vmatprep.subr.bf16.mxu0 %v3143_v20  ;;  %2755 = vmatprep.subr.bf16.mxu1 %v3144_v21 }
 0x43b   :  { %2030 = vmatpush1.bf16.msra.mxu0 %v3141_v22  ;;  %2756 = vmatpush3.bf16.msra.mxu1 %v3145_v23 }
 0x43c   :  { %2031 = vmatprep.subr.bf16.mxu0 %v3148_v26  ;;  %2757 = vmatprep.subr.bf16.mxu1 %v3149_v28  ;;  %v2143_v26 = vld [vmem:[%s3643_s12] sm:$0x7] }
 0x43f   :  { %2032 = vmatpush1.bf16.msra.mxu0 %v3146_v29  ;;  %2758 = vmatpush3.bf16.msra.mxu1 %v3150_v31  ;;  %v2148_v31 = vrot.slane %v2143_v26, %v3461_v2  ;;  %v3198_v2 = vld [vmem:[#allocation7 + $0x90] sm:$0xff]  }
 0x440   :  { %2033 = vmatprep.subr.bf16.mxu0 %v3153_v35  ;;  %2759 = vmatprep.subr.bf16.mxu1 %v3154_v37  ;;  %v2152_v37 = vrot.slane %v2143_v26, %v3464_v3 }
 0x443   :  { %2034 = vmatpush1.bf16.msra.mxu0 %v3151_v38  ;;  %2760 = vmatpush3.bf16.msra.mxu1 %v3155_v27 }
 0x444   :  { %2035 = vmatprep.subr.bf16.mxu0 %v3158_v33  ;;  %2767 = vmatprep.subr.bf16.mxu1 %v3180_v55  ;;  %v2176_v55 = vrot.slane %v2163_v34, %v3479_v10 }
 0x446   :  { %2133 = vmatmul.mubr.bf16.vlgmr.msra.gmra.mrb[12].mxu1 %v1319_v41 }
 0x447   :  { %2036 = vmatpush1.bf16.msra.mxu0 %v3156_v40  ;;  %2768 = vmatpush3.bf16.msra.mxu1 %v3181_v56  ;;  %v3203_v56 = vld [vmem:[#allocation7 + $0xb8] sm:$0xff]  }
 0x448   :  { %2037 = vmatprep.subr.bf16.mxu0 %v3161_v42  ;;  %2769 = vmatprep.subr.bf16.mxu1 %v3182_v57 }
 0x44b   :  { %2038 = vmatpush1.bf16.msra.mxu0 %v3159_v30  ;;  %2770 = vmatpush3.bf16.msra.mxu1 %v3183_v58 }
 0x44c   :  { %2039 = vmatprep.subr.bf16.mxu0 %v3164_v43  ;;  %2771 = vmatprep.subr.bf16.mxu1 %v3184_v59 }
 0x44f   :  { %2040 = vmatpush1.bf16.msra.mxu0 %v3162_v44  ;;  %2772 = vmatpush3.bf16.msra.mxu1 %v3185_v60 }
 0x450   :  { %2041 = vmatprep.subr.bf16.mxu0 %v3167_v45  ;;  %2773 = vmatprep.subr.bf16.mxu1 %v3186_v61 }
 0x453   :  { %2042 = vmatpush1.bf16.msra.mxu0 %v3165_v46  ;;  %2774 = vmatpush3.bf16.msra.mxu1 %v3187_v62  ;;  %v3196_v46 = vld [vmem:[#allocation7 + $0x80] sm:$0xff]  }
 0x454   :  { %2043 = vmatprep.subr.bf16.mxu0 %v3170_v47  ;;  %2775 = vmatprep.subr.bf16.mxu1 %v3188_v63 }
 0x457   :  { %2044 = vmatpush1.bf16.msra.mxu0 %v3168_v48  ;;  %2776 = vmatpush3.bf16.msra.mxu1 %v3189_v0  ;;  %v3197_v48 = vld [vmem:[#allocation7 + $0x88] sm:$0xff]   ;;  %v2689_v0 = vld [vmem:[%s3646_s15] ss:$0 sm:$0xff] }
 0x458   :  { %2045 = vmatprep.subr.bf16.mxu0 %v3173_v49  ;;  %2777 = vmatprep.subr.bf16.mxu1 %v3190_v5  ;;  %v3200_v49 = vld [vmem:[#allocation7 + $0xa0] sm:$0xff]  }
 0x45b   :  { %2046 = vmatpush1.bf16.msra.mxu0 %v3171_v50  ;;  %2778 = vmatpush3.bf16.msra.mxu1 %v3191_v11  ;;  %v3201_v50 = vld [vmem:[#allocation7 + $0xa8] sm:$0xff]  }
 0x45c   :  { %2047 = vmatprep.subr.bf16.mxu0 %v3176_v51  ;;  %2779 = vmatprep.subr.bf16.mxu1 %v3192_v6 }
 0x45f   :  { %2048 = vmatpush1.bf16.msra.mxu0 %v3174_v52  ;;  %2780 = vmatpush3.bf16.msra.mxu1 %v3193_v7  ;;  %v2156_v52 = vrot.slane %v2143_v26, %v3479_v10 }
 0x460   :  { %2049 = vmatprep.subr.bf16.mxu0 %v3179_v53  ;;  %2781 = vmatprep.subr.bf16.mxu1 %v3194_v1  ;;  %v3202_v53 = vld [vmem:[#allocation7 + $0xb0] sm:$0xff]  }
 0x463   :  { %2050 = vmatpush1.bf16.msra.mxu0 %v3177_v54  ;;  %2782 = vmatpush3.bf16.msra.mxu1 %v3195_v4 }
 0x464   :  { %2818 = vmatprep.subr.bf16.mxu1 %v3312_v36 }
 0x466   :  { %2052 = vmatmul.mubr.bf16.vlgmr.msra.gmra.mrb[8].mxu0 %v1319_v41  ;;  %v2172_v41 = vrot.slane %v2163_v34, %v3464_v3  ;;  %v3199_v3 = vld [vmem:[#allocation7 + $0x98] sm:$0xff]  }
 0x4f9   :  { %v2739_v9 = vpop.f32.mrb[8].mxu1 }
 0x4fa   :  { %v2740_v12 = vpop.f32.mrb[9].mxu1 }
 0x4fb   :  { %v2741_v13 = vadd.f32 %v2740_v12, %v2739_v9  ;;  %v2742_v8 = vpop.f32.mrb[10].mxu1 }
 0x4fc   :  { %v2743_v14 = vpop.f32.mrb[11].mxu1 }
 0x4fd   :  { %v2095_v19 = vadd.f32 %v2741_v13, %v1462_v16 }
 0x519   :  { %v2761_v17 = vpop.f32.mrb[12].mxu1 }
 0x51a   :  { %v2762_v18 = vpop.f32.mrb[13].mxu1 }
 0x51b   :  { %v2763_v20 = vadd.f32 %v2762_v18, %v2761_v17  ;;  %v2764_v21 = vpop.f32.mrb[14].mxu1 }
 0x51c   :  { %v2765_v22 = vpop.f32.mrb[15].mxu1 }
 0x51d   :  { %v2135_v23 = vadd.f32 %v2763_v20, %v2095_v19 }
 0x51f   :  { %v2142_v51 = vmax.f32 %v2135_v23, 0.0 }
 0x521   :  { %v2162_v54 = vmul.f32 %v2156_v52, %v2142_v51 }
 0x523   :  { %v2182_v57 = vadd.f32 %v2176_v55, %v2162_v54 }
 0x525   :  { %v2185_v58 = vpack.c.bf16 %v2182_v57, %v2182_v57 }
 0x539   :  { %v2053_v28 = vpop.f32.mrb[8].mxu0 }
 0x53a   :  { %v2842_v29 = vadd.f32 %v2053_v28, %v1454_v24  ;;  %v2055_v32 = vpop.f32.mrb[9].mxu0 }
 0x53b   :  { %v2843_v35 = vadd.f32 %v2055_v32, %v1458_v25  ;;  %v2057_v38 = vpop.f32.mrb[10].mxu0 }
 0x53c   :  { %v2140_v27 = vmax.f32 %v2842_v29, 0.0  ;;  %v2058_v33 = vpop.f32.mrb[11].mxu0 }
 0x53d   :  { %v2141_v40 = vmax.f32 %v2843_v35, 0.0 }
 0x53e   :  { %v2160_v42 = vmul.f32 %v2148_v31, %v2140_v27 }
 0x53f   :  { %v2161_v30 = vmul.f32 %v2152_v37, %v2141_v40 }
 0x540   :  { %v2180_v43 = vadd.f32 %v2168_v39, %v2160_v42 }
 0x541   :  { %v2181_v44 = vadd.f32 %v2172_v41, %v2161_v30 }
 0x542   :  { %v2183_v47 = vpack.c.bf16 %v2180_v43, %v2180_v43 }
 0x543   :  { %v2184_v45 = vpack.c.bf16 %v2181_v44, %v2181_v44 }
 0x545   :  { %2417 = vmatprep.mubr.bf16.mxu1 %v2184_v45 }
 0x546   :  { %2418 = vmatmul.mubr.bf16.vlgmr.msra.gmra.mrb[16].mxu1 %v2183_v47 }
 0x547   :  { %2819 = vmatpush3.bf16.msra.mxu1 %v3196_v46  ;;  %2834 = vmatprep.mubr.msk.bf16.mxu1 %vm3316_vm0, %v3312_v36 }
 0x548   :  { %2820 = vmatprep.subr.bf16.mxu1 %v3312_v36 }
 0x54b   :  { %2821 = vmatpush3.bf16.msra.mxu1 %v3197_v48 }
 0x54c   :  { %2822 = vmatprep.subr.bf16.mxu1 %v3312_v36 }
 0x54f   :  { %2823 = vmatpush3.bf16.msra.mxu1 %v3198_v2 }
 0x550   :  { %2824 = vmatprep.subr.bf16.mxu1 %v3312_v36 }
 0x553   :  { %2825 = vmatpush3.bf16.msra.mxu1 %v3199_v3 }
 0x554   :  { %2826 = vmatprep.subr.bf16.mxu1 %v3312_v36 }
 0x557   :  { %2827 = vmatpush3.bf16.msra.mxu1 %v3200_v49 }
 0x558   :  { %2828 = vmatprep.subr.bf16.mxu1 %v3312_v36 }
 0x55b   :  { %2829 = vmatpush3.bf16.msra.mxu1 %v3201_v50 }
 0x55c   :  { %2830 = vmatprep.subr.bf16.mxu1 %v3312_v36 }
 0x55f   :  { %2831 = vmatpush3.bf16.msra.mxu1 %v3202_v53 }
 0x560   :  { %2832 = vmatprep.subr.bf16.mxu1 %v3312_v36 }
 0x563   :  { %2833 = vmatpush3.bf16.msra.mxu1 %v3203_v56 }
 0x566   :  { %2835 = vmatmul.mubr.bf16.vlgmr.msra.gmra.mrb[20].mxu1 %v2185_v58 }
 0x619   :  { %v2783_v59 = vpop.f32.mrb[16].mxu1 }
 0x61a   :  { %v2784_v60 = vpop.f32.mrb[17].mxu1 }
 0x61b   :  { %v2785_v61 = vadd.f32 %v2784_v60, %v2783_v59  ;;  %v2786_v62 = vpop.f32.mrb[18].mxu1 }
 0x61c   :  { %v2787_v63 = vpop.f32.mrb[19].mxu1 }
 0x61d   :  { %v2420_v10 = vadd.f32 %v2785_v61, %v2689_v0 }
 0x639   :  { %v2459_v5 = vpop.f32.mrb[20].mxu1 }
 0x63a   :  { %v2460_v11 = vadd.f32 %v2459_v5, %v2420_v10  ;;  %v2836_v6 = vpop.f32.mrb[21].mxu1 }
 0x63b   :  { %v2462_v7 = vpop.f32.mrb[22].mxu1 }
 0x63c   :  { %2465 = vst [vmem:[%s3647_s16] sm:$0xff] %v2460_v11  ;;  %v2837_v36 = vpop.f32.mrb[23].mxu1 }
 0x63d   :  { %2470 = vsyncpa [#allocation3], 1 }
 0x63e   :  { %2471 = vsyncpa [#allocation5], 1 }
 0x63f   :  { %2472 = vsyncpa [#allocation8], 1 }

</bundles_post_ra>
